<compile_context>
chip_gen: v5e
topology: v5e:2x2
jax: 0.10.0
libtpu: 0.0.40
codegen_flags: <defaults>
</compile_context>

<pallas_src>
import jax
import jax.numpy as jnp
from jax.experimental import pallas as pl
from jax.experimental.pallas import tpu as pltpu

H_DIM = 32            # h_dim of the module
HID = 32              # inner width of nn.Linear(h_dim, 32)
_MAX_PACK_LANES = 512  # max packed-row width (lanes) for x / W1


def _round_up(v, m):
    return (v + m - 1) // m * m


def _choose_tiling(B, S, H, hid, itemsize, target_block_bytes=2 << 20):
    """Pick (P tokens packed per row, G packed rows per batch row, tb batch
    rows per grid step) using padded (real) VMEM byte footprints."""
    width = max(H, hid)
    # Largest divisor of S whose packed row still fits in _MAX_PACK_LANES.
    P = 1
    for cand in range(1, S + 1):
        if S % cand == 0 and cand * width <= _MAX_PACK_LANES:
            P = cand
    G = S // P
    lane_bytes = _round_up(P * width, 128) * itemsize       # padded row bytes
    rows = max(8, target_block_bytes // lane_bytes)         # packed rows/block
    tb = max(1, int(rows) // G)
    tb = min(tb, B)
    if tb < B:
        # Non-final blocks: keep packed-row count sublane (8) aligned.
        while tb > 1 and (tb * G) % 8 != 0:
            tb -= 1
    elif B > 1:
        # Whole batch fit in one block: split in two so the "parallel" batch
        # axis can shard across both v7x TensorCores - but only if the split
        # keeps non-final blocks sublane-aligned (not the case for tiny B).
        half = -(-B // 2)
        if (half * G) % 8 == 0:
            tb = half
    return P, G, tb


def attn_kernel(x_ref, w1_ref, b1_ref, w2_ref, o_ref):
    # x_ref : (tb*G, P*H)    P tokens packed per lane-dense row
    # w1_ref: (P*H, P*HID)   block-diagonal first linear
    # b1_ref: (1, P*HID)     first-linear bias, tiled per packed token
    # w2_ref: (P*HID, P)     second linear as block-columns (fused regrouping)
    # o_ref : (tb, S)        lane-dense softmax probabilities for this chunk
    tb, seq = o_ref.shape

    # Linear(h_dim, 32) + ReLU for all packed tokens in one wide MXU matmul.
    h = jnp.dot(x_ref[...], w1_ref[...],
                preferred_element_type=jnp.float32,
                precision=jax.lax.Precision.HIGHEST)
    h = jnp.maximum(h + b1_ref[...], 0.0)                    # (tb*G, P*HID)

    # Linear(32, 1) per packed token via the block-column matrix; scores come
    # out already grouped P-per-row. b2 is omitted: it cancels under softmax.
    s = jnp.dot(h, w2_ref[...],
                preferred_element_type=jnp.float32,
                precision=jax.lax.Precision.HIGHEST)          # (tb*G, P)

    # With P == S (whole sequence packed per row, as in the test shape) this
    # reshape is a no-op: scores are already laid out (tb, S) lane-dense.
    s = s.reshape(tb, seq)

    # Numerically stable softmax over the sequence (lane) axis.
    m = jnp.max(s, axis=-1, keepdims=True)
    e = jnp.exp(s - m)
    denom = jnp.sum(e, axis=-1, keepdims=True)
    o_ref[...] = (e / denom).astype(o_ref.dtype)


def attn_forward(x, w1, b1, w2, b2=None):
    """x: (B, S, H) float32 -> (B, S, 1) float32 attention weights."""
    B, S, H = x.shape
    hid = w1.shape[-1]
    del b2  # per-row constant shift: cancels exactly under the softmax

    itemsize = x.dtype.itemsize
    P, G, tb = _choose_tiling(B, S, H, hid, itemsize)
    ph_in, ph_hid = P * H, P * hid
    grid = (pl.cdiv(B, tb),)   # a ragged final block is handled/masked by Pallas

    # Free, row-major-compatible reshape: P consecutive tokens per packed row.
    xp = x.reshape(B * G, ph_in)

    # Packed weights (tiny, built once per call):
    eye = jnp.eye(P, dtype=x.dtype)
    w1p = jnp.kron(eye, w1.astype(x.dtype))                         # (PH_in, PH_hid)
    b1p = jnp.tile(b1.astype(x.dtype).reshape(1, hid), (1, P))      # (1, PH_hid)
    w2p = jnp.kron(eye, w2.astype(x.dtype).reshape(hid, 1))         # (PH_hid, P)

    # --- padded VMEM accounting (sublane-8 / lane-128 roundup) ---
    x_blk = _round_up(tb * G, 8) * _round_up(ph_in, 128) * itemsize
    h_blk = _round_up(tb * G, 8) * _round_up(ph_hid, 128) * 4
    out_blk = _round_up(tb, 8) * _round_up(S, 128) * 4
    w_bytes = (_round_up(ph_in, 8) * _round_up(ph_hid, 128)
               + 8 * _round_up(ph_hid, 128)
               + _round_up(ph_hid, 8) * _round_up(P, 128)) * itemsize
    # double-buffered I/O + ~3 live tile-sized temporaries (dot acc, h) + hdrm
    need = 2 * (x_blk + out_blk) + 2 * w_bytes + 3 * max(x_blk, h_blk) + (4 << 20)
    vmem_limit = int(min(max(need, 16 << 20), 32 << 20))   # <=32 MiB: v7x-safe

    out = pl.pallas_call(
        attn_kernel,
        out_shape=jax.ShapeDtypeStruct((B, S), x.dtype),
        grid_spec=pltpu.PrefetchScalarGridSpec(
            num_scalar_prefetch=0,
            grid=grid,
            in_specs=[
                pl.BlockSpec((tb * G, ph_in), lambda i: (i, 0)),    # x (packed)
                pl.BlockSpec((ph_in, ph_hid), lambda i: (0, 0)),    # W1 blk-diag
                pl.BlockSpec((1, ph_hid), lambda i: (0, 0)),        # b1 tiled
                pl.BlockSpec((ph_hid, P), lambda i: (0, 0)),        # W2 blk-col
            ],
            out_specs=pl.BlockSpec((tb, S), lambda i: (i, 0)),
        ),
        compiler_params=pltpu.CompilerParams(
            dimension_semantics=("parallel",),
            vmem_limit_bytes=vmem_limit,
        ),
    )(xp, w1p, b1p, w2p)

    return out[:, :, None]   # free reshape: the module's unsqueeze(2)


def attn_reference(x, w1, b1, w2, b2):
    B, S, H = x.shape
    flat = x.reshape(-1, H)
    h = jnp.maximum(
        jnp.dot(flat, w1, precision=jax.lax.Precision.HIGHEST) + b1, 0.0)
    s = (jnp.dot(h, w2, precision=jax.lax.Precision.HIGHEST) + b2).reshape(B, S)
    return jax.nn.softmax(s, axis=1)[:, :, None]


if __name__ == "__main__":
    key = jax.random.PRNGKey(0)
    k_x, k_w1, k_b1, k_w2, k_b2 = jax.random.split(key, 5)

    B, S, H = 2, 8, H_DIM  # batch=2, seq=8, hidden=32

    x = jax.random.normal(k_x, (B, S, H), dtype=jnp.float32)
    # Deterministic parameter init (mimicking nn.Linear's uniform fan-in init)
    bound1 = 1.0 / (H ** 0.5)
    w1 = jax.random.uniform(k_w1, (H, HID), jnp.float32, -bound1, bound1)
    b1 = jax.random.uniform(k_b1, (HID,), jnp.float32, -bound1, bound1)
    bound2 = 1.0 / (HID ** 0.5)
    w2 = jax.random.uniform(k_w2, (HID, 1), jnp.float32, -bound2, bound2)
    b2 = jax.random.uniform(k_b2, (1,), jnp.float32, -bound2, bound2)

    out = attn_forward(x, w1, b1, w2, b2)
    out = jax.block_until_ready(out)

    ref = attn_reference(x, w1, b1, w2, b2)
    assert out.shape == (B, S, 1), out.shape
    assert jnp.allclose(out, ref, atol=1e-5, rtol=1e-5), "mismatch vs reference"

    print("KERNEL_OK")
</pallas_src>

<mosaic_0001>
module attributes {stable_mosaic.version = 11 : i64} {
  func.func @attn_kernel(%arg0: i32, %arg1: memref<2x256xf32, #tpu.memory_space<vmem>>, %arg2: memref<256x256xf32, #tpu.memory_space<vmem>>, %arg3: memref<1x256xf32, #tpu.memory_space<vmem>>, %arg4: memref<256x8xf32, #tpu.memory_space<vmem>>, %arg5: memref<2x8xf32, #tpu.memory_space<vmem>>) attributes {dimension_semantics = [#tpu.dimension_semantics<parallel>], iteration_bounds = array<i64: 1>, scalar_prefetch = 0 : i64, scratch_operands = 0 : i64, tpu.core_type = #tpu.core_type<tc>, window_params = [{transform_indices = @transform_0, window_bounds = array<i64: 2, 256>}, {pipeline_mode = #tpu.pipeline_mode<synchronous>, transform_indices = @transform_1, window_bounds = array<i64: 256, 256>}, {pipeline_mode = #tpu.pipeline_mode<synchronous>, transform_indices = @transform_2, window_bounds = array<i64: 1, 256>}, {pipeline_mode = #tpu.pipeline_mode<synchronous>, transform_indices = @transform_3, window_bounds = array<i64: 256, 8>}, {transform_indices = @transform_4, window_bounds = array<i64: 2, 8>}]} {
    %c0 = arith.constant 0 : index
    %c0_0 = arith.constant 0 : index
    %0 = vector.load %arg1[%c0, %c0_0] : memref<2x256xf32, #tpu.memory_space<vmem>>, vector<2x256xf32>
    %c0_1 = arith.constant 0 : index
    %c0_2 = arith.constant 0 : index
    %1 = vector.load %arg2[%c0_1, %c0_2] : memref<256x256xf32, #tpu.memory_space<vmem>>, vector<256x256xf32>
    %cst = arith.constant dense<0.000000e+00> : vector<2x256xf32>
    %2 = tpu.matmul %0, %1, %cst {dimension_numbers = #tpu.dot_dimension_numbers<[1], [0], [0], [1], [0, 0, 1, 1], [], []>, precision = #tpu.contract_precision<fp32>} : vector<2x256xf32>, vector<256x256xf32>, vector<2x256xf32> -> vector<2x256xf32>
    %c0_3 = arith.constant 0 : index
    %c0_4 = arith.constant 0 : index
    %3 = vector.load %arg3[%c0_3, %c0_4] : memref<1x256xf32, #tpu.memory_space<vmem>>, vector<1x256xf32>
    %4 = vector.broadcast %3 : vector<1x256xf32> to vector<2x256xf32>
    %5 = arith.addf %2, %4 : vector<2x256xf32>
    %cst_5 = arith.constant 0.000000e+00 : f32
    %6 = vector.broadcast %cst_5 : f32 to vector<2x256xf32>
    %7 = arith.maximumf %5, %6 : vector<2x256xf32>
    %c0_6 = arith.constant 0 : index
    %c0_7 = arith.constant 0 : index
    %8 = vector.load %arg4[%c0_6, %c0_7] : memref<256x8xf32, #tpu.memory_space<vmem>>, vector<256x8xf32>
    %cst_8 = arith.constant dense<0.000000e+00> : vector<2x8xf32>
    %9 = tpu.matmul %7, %8, %cst_8 {dimension_numbers = #tpu.dot_dimension_numbers<[1], [0], [0], [1], [0, 0, 1, 1], [], []>, precision = #tpu.contract_precision<fp32>} : vector<2x256xf32>, vector<256x8xf32>, vector<2x8xf32> -> vector<2x8xf32>
    %cst_9 = arith.constant dense<0xFF800000> : vector<2xf32>
    %10 = vector.multi_reduction <maximumf>, %9, %cst_9 [1] : vector<2x8xf32> to vector<2xf32>
    %11 = vector.shape_cast %10 : vector<2xf32> to vector<2x1xf32>
    %12 = vector.broadcast %11 : vector<2x1xf32> to vector<2x8xf32>
    %13 = arith.subf %9, %12 : vector<2x8xf32>
    %14 = math.exp %13 : vector<2x8xf32>
    %cst_10 = arith.constant dense<0.000000e+00> : vector<2xf32>
    %15 = vector.multi_reduction <add>, %14, %cst_10 [1] : vector<2x8xf32> to vector<2xf32>
    %16 = vector.shape_cast %15 : vector<2xf32> to vector<2x1xf32>
    %17 = vector.broadcast %16 : vector<2x1xf32> to vector<2x8xf32>
    %18 = arith.divf %14, %17 : vector<2x8xf32>
    %c0_11 = arith.constant 0 : index
    %c0_12 = arith.constant 0 : index
    %19 = vector.load %arg5[%c0_11, %c0_12] : memref<2x8xf32, #tpu.memory_space<vmem>>, vector<2x8xf32>
    tpu.vector_store %arg5[%c0_11, %c0_12], %18 {strides = array<i32>} : memref<2x8xf32, #tpu.memory_space<vmem>>, vector<2x8xf32>,
    return
  }
  func.func @transform_0(%arg0: i32) -> (i32, i32) {
    %c0_i32 = arith.constant 0 : i32
    %c0_i32_0 = arith.constant 0 : i32
    return %arg0, %c0_i32 : i32, i32
  }
  func.func @transform_1(%arg0: i32) -> (i32, i32) {
    %c0_i32 = arith.constant 0 : i32
    %c0_i32_0 = arith.constant 0 : i32
    %c0_i32_1 = arith.constant 0 : i32
    return %c0_i32, %c0_i32_0 : i32, i32
  }
  func.func @transform_2(%arg0: i32) -> (i32, i32) {
    %c0_i32 = arith.constant 0 : i32
    %c0_i32_0 = arith.constant 0 : i32
    %c0_i32_1 = arith.constant 0 : i32
    return %c0_i32, %c0_i32_0 : i32, i32
  }
  func.func @transform_3(%arg0: i32) -> (i32, i32) {
    %c0_i32 = arith.constant 0 : i32
    %c0_i32_0 = arith.constant 0 : i32
    %c0_i32_1 = arith.constant 0 : i32
    return %c0_i32, %c0_i32_0 : i32, i32
  }
  func.func @transform_4(%arg0: i32) -> (i32, i32) {
    %c0_i32 = arith.constant 0 : i32
    %c0_i32_0 = arith.constant 0 : i32
    return %arg0, %c0_i32 : i32, i32
  }
}

</mosaic_0001>

<bundles_post_ra>
// kernel: tpu_custom_call.1
= control target key start
LH: loop header
LB: loop body
LE: loop exit
PB: predicated region body
PF: predicated region fallthrough
CT: control target
= control target key end

     0   :  { %9 = vsyncpa [#allocation3], 0  ;;  %s3932_s0 = inlined_call_operand.vmem [shape: f32[2,256], index: 0, kind: input, shape index: {}]   ;;  %s3933_s1 = inlined_call_operand.hbm [shape: f32[256,256], index: 1, kind: input, shape index: {}]   ;;  %s3934_s2 = inlined_call_operand.vmem [shape: f32[1,256], index: 2, kind: input, shape index: {}]   ;;  %s3935_s3 = inlined_call_operand.vmem [shape: f32[256,8], index: 3, kind: input, shape index: {}]   ;;  %s3936_s4 = inlined_call_operand.hbm [shape: f32[2,8], index: 4, kind: output, shape index: {}]  }
   0x1   :  { %10 = vsyncpa [#allocation4], 0  ;;  %s17_s17 = sshll.u32 %s3933_s1, 4  ;;  %s2294_s18 = smov [#allocation2]   ;;  %s18_s17 = int_to_ptr.hbm [resolvable:$true] %s17_s17 }
   0x2   :  { %s19_s19 = sshll.u32 %s2294_s18, 4  ;;  %s2295_s20 = smov 256   ;;  %s20_s19 = int_to_ptr.vmem [resolvable:$true] %s19_s19 }
   0x3   :  { %s2296_s21 = smov 16  }
   0x4   :  { %25 = dma.hbm_to_vmem [thread:$0]  %s18_s17, 8192, %s20_s19, [#allocation3], %s2295_s20, %s2295_s20, %s2296_s21  }
   0x5   :  { %2290 = dma.done.wait [#allocation3], 8192  }
   0x6   :  { %2291 = vsyncadd [#allocation3], 4294959104  ;;  %v65_v0 = vld [vmem:[#allocation2 + $0xf0] sm:$0xff]  ;;  %v63_v1 = vld [vmem:[#allocation2 + $0xe0] sm:$0xff]  ;;  %vm2191_vm0 = vcmask 58368   ;;  %s2224_s7 = sshll.u32 %s3936_s4, 4  ;;  %s2225_s7 = int_to_ptr.hbm [resolvable:$true] %s2224_s7 }
   0x7   :  { %v61_v2 = vld [vmem:[#allocation2 + $0xd0] sm:$0xff]  ;;  %v2326_v3 = vand.u32 4294901760, %v65_v0  ;;  %v2328_v4 = vand.u32 4294901760, %v63_v1  ;;  %v59_v6 = vld [vmem:[#allocation2 + $0xc0] sm:$0xff]  ;;  %v34_v55 = vld [vmem:[%s3932_s0] sm:$0xf] }
   0x8   :  { %v2330_v5 = vand.u32 4294901760, %v61_v2  ;;  %v57_v7 = vld [vmem:[#allocation2 + $0xb0] sm:$0xff]  ;;  %v55_v8 = vld [vmem:[#allocation2 + $0xa0] sm:$0xff]  ;;  %v2332_v9 = vand.u32 4294901760, %v59_v6  ;;  %106 = vst [vmem:[#allocation1] ss:$4 sm:$0xff] %v34_v55 }
   0x9   :  { %v2334_v10 = vand.u32 4294901760, %v57_v7  ;;  %v2336_v11 = vand.u32 4294901760, %v55_v8  ;;  %v53_v12 = vld [vmem:[#allocation2 + $0x90] sm:$0xff]  ;;  %v51_v13 = vld [vmem:[#allocation2 + $0x80] sm:$0xff]  ;;  %112 = vmatpush.msra.mxu0 %v2326_v3  ;;  %v2340_v14 = vsub.f32 %v65_v0, %v2326_v3  ;;  %v2343_v15 = vsub.f32 %v63_v1, %v2328_v4  ;;  %308 = vmatpush.msra.mxu3 %v2326_v3 }
   0xa   :  { %v2347_v16 = vsub.f32 %v61_v2, %v2330_v5  ;;  %v2349_v17 = vand.u32 4294901760, %v53_v12  ;;  %v2352_v18 = vsub.f32 %v59_v6, %v2332_v9  ;;  %v49_v21 = vld [vmem:[#allocation2 + $0x70] sm:$0xff]  ;;  %v2365_v25 = vand.u32 4294901760, %v51_v13  ;;  %v47_v26 = vld [vmem:[#allocation2 + $0x60] sm:$0xff] }
   0xb   :  { %v2355_v19 = vsub.f32 %v57_v7, %v2334_v10  ;;  %v2358_v20 = vsub.f32 %v55_v8, %v2336_v11  ;;  %114 = vmatpush.msra.mxu0 %v2328_v4  ;;  %255 = vmatpush.msra.mxu2 %v2340_v14  ;;  %v154_v22 = vand.u32 4294901760, %v2340_v14  ;;  %v3952_v23 = vand.u32 4294901760, %v2343_v15  ;;  %v45_v36 = vld [vmem:[#allocation2 + $0x50] sm:$0xff]  ;;  %v43_v42 = vld [vmem:[#allocation2 + $0x40] sm:$0xff] }
   0xc   :  { %v3950_v24 = vand.u32 4294901760, %v2347_v16  ;;  %310 = vmatpush.msra.mxu3 %v2328_v4  ;;  %v3949_v27 = vand.u32 4294901760, %v2352_v18  ;;  %v2371_v29 = vsub.f32 %v53_v12, %v2349_v17  ;;  %v2384_v33 = vand.u32 4294901760, %v49_v21  ;;  %v41_v47 = vld [vmem:[#allocation2 + $0x30] sm:$0xff]  ;;  %v39_v54 = vld [vmem:[#allocation2 + $0x20] sm:$0xff] }
   0xd   :  { %v3946_v28 = vand.u32 4294901760, %v2355_v19  ;;  %116 = vmatpush.msra.mxu0 %v2330_v5  ;;  %258 = vmatpush.msra.mxu2 %v2343_v15  ;;  %v155_v30 = vsub.f32 %v2340_v14, %v154_v22  ;;  %v161_v31 = vsub.f32 %v2343_v15, %v3952_v23  ;;  %v2387_v34 = vand.u32 4294901760, %v47_v26  ;;  %v97_v60 = vld [vmem:[#allocation2 + $0x1f0] sm:$0xff]  ;;  %v35_v6 = vld [vmem:[#allocation2] sm:$0xff] }
   0xe   :  { %v167_v32 = vsub.f32 %v2347_v16, %v3950_v24  ;;  %312 = vmatpush.msra.mxu3 %v2330_v5  ;;  %v3944_v35 = vand.u32 4294901760, %v2358_v20  ;;  %v173_v39 = vsub.f32 %v2352_v18, %v3949_v27  ;;  %v2396_v40 = vsub.f32 %v51_v13, %v2365_v25  ;;  %v37_v62 = vld [vmem:[#allocation2 + $0x10] sm:$0xff]  ;;  %v95_v7 = vld [vmem:[#allocation2 + $0x1e0] sm:$0xff] }
   0xf   :  { %118 = vmatpush.msra.mxu0 %v2332_v9  ;;  %v156_v37 = vand.u32 4294901760, %v155_v30  ;;  %261 = vmatpush.msra.mxu2 %v2347_v16  ;;  %v162_v38 = vand.u32 4294901760, %v161_v31  ;;  %v179_v41 = vsub.f32 %v2355_v19, %v3946_v28  ;;  %v2403_v44 = vand.u32 4294901760, %v45_v36 }
  0x10   :  { %314 = vmatpush.msra.mxu3 %v2332_v9  ;;  %v168_v43 = vand.u32 4294901760, %v167_v32  ;;  %v3943_v45 = vand.u32 4294901760, %v2371_v29  ;;  %v2407_v46 = vsub.f32 %v49_v21, %v2384_v33  ;;  %v185_v48 = vsub.f32 %v2358_v20, %v3944_v35 }
  0x11   :  { %120 = vmatpush.msra.mxu0 %v2334_v10  ;;  %157 = vmatpush.msra.mxu1 %v156_v37  ;;  %v174_v49 = vand.u32 4294901760, %v173_v39  ;;  %v2415_v50 = vand.u32 4294901760, %v43_v42  ;;  %v3942_v51 = vand.u32 4294901760, %v2396_v40  ;;  %v2419_v52 = vsub.f32 %v47_v26, %v2387_v34 }
  0x12   :  { %264 = vmatpush.msra.mxu2 %v2352_v18  ;;  %316 = vmatpush.msra.mxu3 %v2334_v10  ;;  %v2423_v53 = vand.u32 4294901760, %v41_v47  ;;  %v180_v56 = vand.u32 4294901760, %v179_v41  ;;  %v191_v57 = vsub.f32 %v2371_v29, %v3943_v45  ;;  %v3941_v58 = vand.u32 4294901760, %v2407_v46  ;;  %v83_v45 = vld [vmem:[#allocation2 + $0x180] sm:$0xff] }
  0x13   :  { %122 = vmatpush.msra.mxu0 %v2336_v11  ;;  %163 = vmatpush.msra.mxu1 %v162_v38  ;;  %v2434_v59 = vsub.f32 %v45_v36, %v2403_v44  ;;  %v186_v61 = vand.u32 4294901760, %v185_v48  ;;  %v197_v63 = vsub.f32 %v2396_v40, %v3942_v51  ;;  %v2442_v0 = vand.u32 4294901760, %v39_v54  ;;  %v93_v36 = vld [vmem:[#allocation2 + $0x1d0] sm:$0xff] }
  0x14   :  { %267 = vmatpush.msra.mxu2 %v2355_v19  ;;  %318 = vmatpush.msra.mxu3 %v2336_v11  ;;  %v3940_v1 = vand.u32 4294901760, %v2419_v52  ;;  %v2446_v2 = vsub.f32 %v43_v42, %v2415_v50  ;;  %v2451_v8 = vsub.f32 %v41_v47, %v2423_v53  ;;  %v2453_v12 = vand.u32 4294901760, %v97_v60  ;;  %v91_v47 = vld [vmem:[#allocation2 + $0x1c0] sm:$0xff] }
  0x15   :  { %124 = vmatpush.msra.mxu0 %v2349_v17  ;;  %169 = vmatpush.msra.mxu1 %v168_v43  ;;  %v192_v13 = vand.u32 4294901760, %v191_v57  ;;  %v203_v21 = vsub.f32 %v2407_v46, %v3941_v58  ;;  %v2459_v26 = vand.u32 4294901760, %v37_v62  ;;  %v3938_v30 = vand.u32 4294901760, %v2434_v59  ;;  %v85_v58 = vld [vmem:[#allocation2 + $0x190] sm:$0xff] }
  0x16   :  { %270 = vmatpush.msra.mxu2 %v2358_v20  ;;  %320 = vmatpush.msra.mxu3 %v2349_v17  ;;  %v2464_v31 = vand.u32 4294901760, %v35_v6  ;;  %v2466_v32 = vand.u32 4294901760, %v95_v7  ;;  %v198_v37 = vand.u32 4294901760, %v197_v63  ;;  %v209_v38 = vsub.f32 %v2419_v52, %v3940_v1 }
  0x17   :  { %126 = vmatpush.msra.mxu0 %v2365_v25  ;;  %175 = vmatpush.msra.mxu1 %v174_v49  ;;  %v3937_v39 = vand.u32 4294901760, %v2446_v2  ;;  %v2474_v41 = vsub.f32 %v39_v54, %v2442_v0  ;;  %v3939_v42 = vand.u32 4294901760, %v2451_v8  ;;  %v2480_v43 = vsub.f32 %v97_v60, %v2453_v12  ;;  %v89_v60 = vld [vmem:[#allocation2 + $0x1b0] sm:$0xff] }
  0x18   :  { %273 = vmatpush.msra.mxu2 %v2371_v29  ;;  %322 = vmatpush.msra.mxu3 %v2365_v25  ;;  %3984 = vst [vmem:[#allocation8_spill] sm:$0xff] %v2464_v31  ;;  %v204_v48 = vand.u32 4294901760, %v203_v21  ;;  %v215_v49 = vsub.f32 %v2434_v59, %v3938_v30  ;;  %v2487_v54 = vsub.f32 %v37_v62, %v2459_v26  ;;  %v2489_v55 = vand.u32 4294901760, %v93_v36  ;;  %v87_v21 = vld [vmem:[#allocation2 + $0x1a0] sm:$0xff] }
  0x19   :  { %128 = vmatpush.msra.mxu0 %v2384_v33  ;;  %181 = vmatpush.msra.mxu1 %v180_v56  ;;  %v2494_v56 = vsub.f32 %v35_v6, %v2464_v31  ;;  %v2497_v57 = vsub.f32 %v95_v7, %v2466_v32  ;;  %v221_v62 = vsub.f32 %v2446_v2, %v3937_v39  ;;  %v3945_v63 = vand.u32 4294901760, %v2474_v41 }
  0x1a   :  { %276 = vmatpush.msra.mxu2 %v2396_v40  ;;  %324 = vmatpush.msra.mxu3 %v2384_v33  ;;  %v227_v6 = vsub.f32 %v2451_v8, %v3939_v42  ;;  %v3947_v7 = vand.u32 4294901760, %v2480_v43  ;;  %v2515_v39 = vsub.f32 %v93_v36, %v2489_v55  ;;  %v2517_v30 = vand.u32 4294901760, %v89_v60 }
  0x1b   :  { %130 = vmatpush.msra.mxu0 %v2387_v34  ;;  %187 = vmatpush.msra.mxu1 %v186_v61  ;;  %v210_v61 = vand.u32 4294901760, %v209_v38  ;;  %v3948_v38 = vand.u32 4294901760, %v2487_v54  ;;  %v3953_v42 = vand.u32 4294901760, %v2494_v56  ;;  %v3951_v1 = vand.u32 4294901760, %v2497_v57 }
  0x1c   :  { %279 = vmatpush.msra.mxu2 %v2407_v46  ;;  %326 = vmatpush.msra.mxu3 %v2387_v34  ;;  %v233_v36 = vsub.f32 %v2474_v41, %v3945_v63  ;;  %v2530_v51 = vand.u32 4294901760, %v87_v21  ;;  %v228_v35 = vand.u32 4294901760, %v227_v6  ;;  %v2543_v63 = vsub.f32 %v89_v60, %v2517_v30  ;;  %v81_v6 = vld [vmem:[#allocation2 + $0x170] sm:$0xff] }
  0x1d   :  { %132 = vmatpush.msra.mxu0 %v2403_v44  ;;  %193 = vmatpush.msra.mxu1 %v192_v13  ;;  %v2504_v13 = vand.u32 4294901760, %v91_v47  ;;  %v2545_v28 = vand.u32 4294901760, %v85_v58  ;;  %v245_v60 = vsub.f32 %v2494_v56, %v3953_v42  ;;  %v2565_v23 = vand.u32 4294901760, %v81_v6 }
  0x1e   :  { %282 = vmatpush.msra.mxu2 %v2419_v52  ;;  %328 = vmatpush.msra.mxu3 %v2403_v44  ;;  %v2560_v24 = vsub.f32 %v87_v21, %v2530_v51  ;;  %v3986_v14 = vand.u32 4294901760, %v2343_v15  ;;  %v3988_v15 = vand.u32 4294901760, %v2347_v16  ;;  %v3990_v16 = vand.u32 4294901760, %v2352_v18 }
  0x1f   :  { %134 = vmatpush.msra.mxu0 %v2415_v50  ;;  %199 = vmatpush.msra.mxu1 %v198_v37  ;;  %v216_v37 = vand.u32 4294901760, %v215_v49  ;;  %v2528_v49 = vsub.f32 %v91_v47, %v2504_v13  ;;  %v239_v47 = vsub.f32 %v2487_v54, %v3948_v38  ;;  %v234_v38 = vand.u32 4294901760, %v233_v36 }
  0x20   :  { %285 = vmatpush.msra.mxu2 %v2434_v59  ;;  %330 = vmatpush.msra.mxu3 %v2415_v50  ;;  %v3985_v36 = vand.u32 4294901760, %v2515_v39  ;;  %v2573_v27 = vsub.f32 %v85_v58, %v2545_v28  ;;  %v3992_v18 = vand.u32 4294901760, %v2355_v19  ;;  %v3994_v19 = vand.u32 4294901760, %v2358_v20 }
  0x21   :  { %136 = vmatpush.msra.mxu0 %v2423_v53  ;;  %205 = vmatpush.msra.mxu1 %v204_v48  ;;  %v222_v48 = vand.u32 4294901760, %v221_v62  ;;  %v79_v62 = vld [vmem:[#allocation2 + $0x160] sm:$0xff]  ;;  %v3997_v20 = vand.u32 4294901760, %v2371_v29  ;;  %v3999_v29 = vand.u32 4294901760, %v2396_v40  ;;  %v4001_v40 = vand.u32 4294901760, %v2407_v46 }
  0x22   :  { %288 = vmatpush.msra.mxu2 %v2446_v2  ;;  %332 = vmatpush.msra.mxu3 %v2423_v53  ;;  %v508_v42 = vsub.f32 %v2515_v39, %v3985_v36  ;;  %v3987_v36 = vand.u32 4294901760, %v2528_v49  ;;  %v4003_v46 = vand.u32 4294901760, %v2419_v52 }
  0x23   :  { %138 = vmatpush.msra.mxu0 %v2442_v0  ;;  %211 = vmatpush.msra.mxu1 %v210_v61  ;;  %v496_v61 = vsub.f32 %v2480_v43, %v3947_v7  ;;  %v2552_v7 = vand.u32 4294901760, %v83_v45 }
  0x24   :  { %291 = vmatpush.msra.mxu2 %v2451_v8  ;;  %334 = vmatpush.msra.mxu3 %v2442_v0  ;;  %v514_v21 = vsub.f32 %v2528_v49, %v3987_v36 }
  0x25   :  { %140 = vmatpush.msra.mxu0 %v2459_v26  ;;  %217 = vmatpush.msra.mxu1 %v216_v37  ;;  %v502_v37 = vsub.f32 %v2497_v57, %v3951_v1  ;;  %v497_v1 = vand.u32 4294901760, %v496_v61  ;;  %v77_v61 = vld [vmem:[#allocation2 + $0x150] sm:$0xff] }
  0x26   :  { %294 = vmatpush.msra.mxu2 %v2474_v41  ;;  %336 = vmatpush.msra.mxu3 %v2459_v26  ;;  %v2598_v58 = vand.u32 4294901760, %v77_v61 }
  0x27   :  { %142 = vmatpush.msra.mxu0 %v2464_v31  ;;  %223 = vmatpush.msra.mxu1 %v222_v48  ;;  %v240_v48 = vand.u32 4294901760, %v239_v47  ;;  %v246_v47 = vand.u32 4294901760, %v245_v60  ;;  %v3989_v60 = vand.u32 4294901760, %v2543_v63 }
  0x28   :  { %297 = vmatpush.msra.mxu2 %v2487_v54  ;;  %338 = vmatpush.msra.mxu3 %v2464_v31  ;;  %v2586_v31 = vand.u32 4294901760, %v79_v62 }
  0x29   :  { %349 = vmatpush.msrb.mxu0 %v154_v22  ;;  %229 = vmatpush.msra.mxu1 %v228_v35  ;;  %v503_v22 = vand.u32 4294901760, %v502_v37  ;;  %v2579_v35 = vsub.f32 %v83_v45, %v2552_v7  ;;  %v2591_v45 = vsub.f32 %v81_v6, %v2565_v23  ;;  %v75_v37 = vld [vmem:[#allocation2 + $0x140] sm:$0xff]  ;;  %v73_v6 = vld [vmem:[#allocation2 + $0x130] sm:$0xff] }
  0x2a   :  { %300 = vmatpush.msra.mxu2 %v2494_v56  ;;  %498 = vmatpush.msrb.mxu3 %v497_v1  ;;  %v2610_v36 = vand.u32 4294901760, %v75_v37  ;;  %v2623_v1 = vand.u32 4294901760, %v73_v6 }
  0x2b   :  { %353 = vmatpush.msrb.mxu0 %v3986_v14  ;;  %235 = vmatpush.msra.mxu1 %v234_v38  ;;  %v509_v38 = vand.u32 4294901760, %v508_v42  ;;  %v520_v14 = vsub.f32 %v2543_v63, %v3989_v60  ;;  %v3991_v42 = vand.u32 4294901760, %v2560_v24  ;;  %v2608_v60 = vsub.f32 %v79_v62, %v2586_v31 }
  0x2c   :  { %453 = vmatpush.msrb.mxu2 %v2453_v12  ;;  %504 = vmatpush.msrb.mxu3 %v503_v22  ;;  %v2621_v62 = vsub.f32 %v77_v61, %v2598_v58  ;;  %v2634_v61 = vsub.f32 %v75_v37, %v2610_v36 }
  0x2d   :  { %357 = vmatpush.msrb.mxu0 %v3988_v15  ;;  %241 = vmatpush.msra.mxu1 %v240_v48  ;;  %v515_v48 = vand.u32 4294901760, %v514_v21  ;;  %v526_v15 = vsub.f32 %v2560_v24, %v3991_v42  ;;  %v521_v21 = vand.u32 4294901760, %v520_v14 }
  0x2e   :  { %455 = vmatpush.msrb.mxu2 %v2466_v32  ;;  %510 = vmatpush.msrb.mxu3 %v509_v38  ;;  %v71_v38 = vld [vmem:[#allocation2 + $0x120] sm:$0xff] }
  0x2f   :  { %361 = vmatpush.msrb.mxu0 %v3990_v16  ;;  %247 = vmatpush.msra.mxu1 %v246_v47  ;;  %v107_v47 = vld.sshfl [vmem:[#allocation1] sm:$0xff pattern:$0x73625140]  ;;  %v3993_v16 = vand.u32 4294901760, %v2573_v27  ;;  %v527_v14 = vand.u32 4294901760, %v526_v15  ;;  %v2646_v37 = vand.u32 4294901760, %v71_v38 }
  0x30   :  { %457 = vmatpush.msrb.mxu2 %v2489_v55  ;;  %516 = vmatpush.msrb.mxu3 %v515_v48  ;;  %v2636_v22 = vand.u32 4294901760, %v107_v47 }
  0x31   :  { %365 = vmatpush.msrb.mxu0 %v3992_v18  ;;  %416 = vmatpush.msrb.mxu1 %v2326_v3  ;;  %v532_v42 = vsub.f32 %v2573_v27, %v3993_v16  ;;  %v3995_v3 = vand.u32 4294901760, %v2579_v35  ;;  %v2649_v16 = vsub.f32 %v73_v6, %v2623_v1 }
  0x32   :  { %459 = vmatpush.msrb.mxu2 %v2504_v13  ;;  %3996 = vst [vmem:[#allocation9_spill] sm:$0xff] %v2636_v22  ;;  %522 = vmatpush.msrb.mxu3 %v521_v21  ;;  %v4000_v21 = vand.u32 4294901760, %v2608_v60  ;;  %v2660_v15 = vsub.f32 %v107_v47, %v2636_v22  ;;  %v2673_v47 = vsub.f32 %v71_v38, %v2646_v37 }
  0x33   :  { %369 = vmatpush.msrb.mxu0 %v3994_v19  ;;  %418 = vmatpush.msrb.mxu1 %v2328_v4  ;;  %v538_v18 = vsub.f32 %v2579_v35, %v3995_v3  ;;  %v3998_v4 = vand.u32 4294901760, %v2591_v45  ;;  %v69_v3 = vld [vmem:[#allocation2 + $0x110] sm:$0xff]  ;;  %v533_v48 = vand.u32 4294901760, %v532_v42 }
  0x34   :  { %461 = vmatpush.msrb.mxu2 %v2517_v30  ;;  %528 = vmatpush.msrb.mxu3 %v527_v14  ;;  %v550_v42 = vsub.f32 %v2608_v60, %v4000_v21  ;;  %v2662_v6 = vand.u32 4294901760, %v69_v3 }
  0x35   :  { %373 = vmatpush.msrb.mxu0 %v3997_v20  ;;  %420 = vmatpush.msrb.mxu1 %v2330_v5  ;;  %v544_v19 = vsub.f32 %v2591_v45, %v3998_v4  ;;  %v539_v5 = vand.u32 4294901760, %v538_v18  ;;  %v67_v20 = vld [vmem:[#allocation2 + $0x100] sm:$0xff]  ;;  %v561_v4 = vand.u32 4294901760, %v2634_v61  ;;  %v4002_v18 = vand.u32 4294901760, %v2621_v62 }
  0x36   :  { %463 = vmatpush.msrb.mxu2 %v2530_v51  ;;  %534 = vmatpush.msrb.mxu3 %v533_v48  ;;  %v2675_v21 = vand.u32 4294901760, %v67_v20  ;;  %v2685_v48 = vand.u32 4294901760, %v2660_v15  ;;  %v2688_v38 = vsub.f32 %v69_v3, %v2662_v6  ;;  %v4006_v3 = vand.u32 4294901760, %v2446_v2 }
  0x37   :  { %377 = vmatpush.msrb.mxu0 %v3999_v29  ;;  %422 = vmatpush.msrb.mxu1 %v2332_v9  ;;  %v545_v9 = vand.u32 4294901760, %v544_v19  ;;  %v556_v14 = vsub.f32 %v2621_v62, %v4002_v18  ;;  %v567_v29 = vand.u32 4294901760, %v2649_v16  ;;  %v562_v19 = vsub.f32 %v2634_v61, %v561_v4 }
  0x38   :  { %465 = vmatpush.msrb.mxu2 %v2545_v28  ;;  %540 = vmatpush.msrb.mxu3 %v539_v5  ;;  %4004 = vst [vmem:[#allocation10_spill] sm:$0xff] %v2685_v48  ;;  %v573_v5 = vand.u32 4294901760, %v2673_v47  ;;  %v579_v18 = vand.u32 4294901760, %v2688_v38 }
  0x39   :  { %381 = vmatpush.msrb.mxu0 %v4001_v40  ;;  %424 = vmatpush.msrb.mxu1 %v2334_v10  ;;  %v551_v10 = vand.u32 4294901760, %v550_v42  ;;  %v4005_v40 = vand.u32 4294901760, %v2434_v59  ;;  %v568_v52 = vsub.f32 %v2649_v16, %v567_v29  ;;  %v2699_v42 = vsub.f32 %v67_v20, %v2675_v21  ;;  %v108_v59 = vld.sshfl [vmem:[#allocation1 + $0x8] sm:$0xff pattern:$0x73625140] }
  0x3a   :  { %467 = vmatpush.msrb.mxu2 %v2552_v7  ;;  %546 = vmatpush.msrb.mxu3 %v545_v9  ;;  %v146_v9 = vsub.f32 %v2660_v15, %v2685_v48 }
  0x3b   :  { %385 = vmatpush.msrb.mxu0 %v4003_v46  ;;  %426 = vmatpush.msrb.mxu1 %v2336_v11  ;;  %v557_v11 = vand.u32 4294901760, %v556_v14  ;;  %v4007_v14 = vand.u32 4294901760, %v2451_v8  ;;  %v569_v2 = vand.u32 4294901760, %v568_v52  ;;  %v585_v20 = vand.u32 4294901760, %v2699_v42 }
  0x3c   :  { %469 = vmatpush.msrb.mxu2 %v2565_v23  ;;  %552 = vmatpush.msrb.mxu3 %v551_v10  ;;  %v2716_v46 = vand.u32 4294901760, %v108_v59  ;;  %v4009_v10 = vand.u32 4294901760, %v2474_v41  ;;  %v580_v8 = vsub.f32 %v2688_v38, %v579_v18 }
  0x3d   :  { %389 = vmatpush.msrb.mxu0 %v4005_v40  ;;  %428 = vmatpush.msrb.mxu1 %v2349_v17  ;;  %v563_v17 = vand.u32 4294901760, %v562_v19  ;;  %v4010_v19 = vand.u32 4294901760, %v2487_v54 }
  0x3e   :  { %471 = vmatpush.msrb.mxu2 %v2586_v31  ;;  %558 = vmatpush.msrb.mxu3 %v557_v11  ;;  %4008 = vst [vmem:[#allocation11_spill] sm:$0xff] %v2716_v46  ;;  %v2735_v40 = vsub.f32 %v108_v59, %v2716_v46  ;;  %v4012_v11 = vand.u32 4294901760, %v2494_v56  ;;  %v4016_v56 = vld [vmem:[#allocation8_spill] sm:$0xff] }
  0x3f   :  { %393 = vmatpush.msrb.mxu0 %v4006_v3  ;;  %430 = vmatpush.msrb.mxu1 %v2365_v25  ;;  %v574_v25 = vsub.f32 %v2673_v47, %v573_v5 }
  0x40   :  { %473 = vmatpush.msrb.mxu2 %v2598_v58  ;;  %564 = vmatpush.msrb.mxu3 %v563_v17  ;;  %4011 = vst [vmem:[#allocation12_spill] sm:$0xff] %v2735_v40  ;;  %v2746_v52 = vand.u32 4294901760, %v2735_v40  ;;  %v50_v17 = vld [vmem:[#allocation2 + $0x78] sm:$0xff] }
  0x41   :  { %397 = vmatpush.msrb.mxu0 %v4007_v14  ;;  %432 = vmatpush.msrb.mxu1 %v2384_v33  ;;  %v2722_v33 = vand.u32 4294901760, %v146_v9  ;;  %v575_v41 = vand.u32 4294901760, %v574_v25  ;;  %v48_v14 = vld [vmem:[#allocation2 + $0x68] sm:$0xff] }
  0x42   :  { %475 = vmatpush.msrb.mxu2 %v2610_v36  ;;  %570 = vmatpush.msrb.mxu3 %v569_v2  ;;  %4013 = vst [vmem:[#allocation13_spill] sm:$0xff] %v2746_v52  ;;  %v2890_v2 = vand.u32 4294901760, %v50_v17 }
  0x43   :  { %401 = vmatpush.msrb.mxu0 %v4009_v10  ;;  %434 = vmatpush.msrb.mxu1 %v2387_v34  ;;  %v586_v34 = vsub.f32 %v2699_v42, %v585_v20 }
  0x44   :  { %477 = vmatpush.msrb.mxu2 %v2623_v1  ;;  %148 = vmatmul.f32.vlgmr.msra.gmra.mxu0 %v2722_v33 }
  0x45   :  { %405 = vmatpush.msrb.mxu0 %v4010_v19  ;;  %436 = vmatpush.msrb.mxu1 %v2403_v44  ;;  %v581_v44 = vand.u32 4294901760, %v580_v8  ;;  %v587_v54 = vand.u32 4294901760, %v586_v34  ;;  %v46_v19 = vld [vmem:[#allocation2 + $0x58] sm:$0xff] }
  0x46   :  { %479 = vmatpush.msrb.mxu2 %v2646_v37  ;;  %576 = vmatpush.msrb.mxu3 %v575_v41 }
  0x47   :  { %409 = vmatpush.msrb.mxu0 %v4012_v11  ;;  %438 = vmatpush.msrb.mxu1 %v2415_v50  ;;  %v4014_v50 = vand.u32 4294901760, %v2480_v43 }
  0x48   :  { %481 = vmatpush.msrb.mxu2 %v2662_v6  ;;  %582 = vmatpush.msrb.mxu3 %v581_v44 }
  0x49   :  { %596 = vmatpush.msra.mxu0 %v2480_v43  ;;  %440 = vmatpush.msrb.mxu1 %v2423_v53  ;;  %v487_v53 = vsub.f32 %v2735_v40, %v2746_v52 }
  0x4a   :  { %483 = vmatpush.msrb.mxu2 %v2675_v21  ;;  %588 = vmatpush.msrb.mxu3 %v587_v54  ;;  %v2917_v54 = vsub.f32 %v50_v17, %v2890_v2  ;;  %v98_v17 = vld [vmem:[#allocation2 + $0x1f8] sm:$0xff] }
  0x4b   :  { %599 = vmatpush.msra.mxu0 %v2497_v57  ;;  %442 = vmatpush.msrb.mxu1 %v2442_v0  ;;  %v4015_v0 = vand.u32 4294901760, %v2497_v57  ;;  %v2767_v43 = vand.u32 4294901760, %v487_v53  ;;  %v4019_v57 = vand.u32 4294901760, %v2528_v49 }
  0x4c   :  { %303 = vmatmul.f32.vlgmr.msra.gmra.mxu2 %v2660_v15  ;;  %342 = vmatmul.f32.vlgmr.msra.gmra.mxu3 %v2685_v48 }
  0x4d   :  { %602 = vmatpush.msra.mxu0 %v2515_v39  ;;  %690 = vmatpush.msra.mxu2 %v4014_v50  ;;  %4018 = vst [vmem:[#allocation8_spill] sm:$0xff] %v2767_v43 }
  0x4e   :  { %444 = vmatpush.msrb.mxu1 %v2459_v26  ;;  %757 = vmatpush.msra.mxu3 %v2453_v12  ;;  %v4017_v26 = vand.u32 4294901760, %v2515_v39  ;;  %v4020_v39 = vand.u32 4294901760, %v2543_v63 }
  0x4f   :  { %605 = vmatpush.msra.mxu0 %v2528_v49  ;;  %694 = vmatpush.msra.mxu2 %v4015_v0  ;;  %v2923_v0 = vand.u32 4294901760, %v46_v19 }
  0x50   :  { %446 = vmatpush.msrb.mxu1 %v4016_v56  ;;  %759 = vmatpush.msra.mxu3 %v2466_v32 }
  0x51   :  { %608 = vmatpush.msra.mxu0 %v2543_v63  ;;  %249 = vmatmul.f32.vlgmr.msra.gmra.mxu1 %v2636_v22 }
  0x52   :  { %698 = vmatpush.msra.mxu2 %v4017_v26  ;;  %649 = vmatpush.msra.mxu1 %v2453_v12  ;;  %v4021_v12 = vand.u32 4294901760, %v2560_v24 }
  0x53   :  { %611 = vmatpush.msra.mxu0 %v2560_v24  ;;  %761 = vmatpush.msra.mxu3 %v2489_v55  ;;  %v4023_v24 = vand.u32 4294901760, %v2579_v35 }
  0x54   :  { %702 = vmatpush.msra.mxu2 %v4019_v57  ;;  %651 = vmatpush.msra.mxu1 %v2466_v32  ;;  %v4022_v32 = vand.u32 4294901760, %v2573_v27  ;;  %v42_v57 = vld [vmem:[#allocation2 + $0x38] sm:$0xff] }
  0x55   :  { %489 = vmatmul.f32.vlgmr.msrb.gmra.mxu2 %v2767_v43  ;;  %614 = vmatpush.msra.mxu0 %v2573_v27  ;;  %v64_v27 = vld [vmem:[#allocation2 + $0xe8] sm:$0xff] }
  0x56   :  { %653 = vmatpush.msra.mxu1 %v2489_v55  ;;  %706 = vmatpush.msra.mxu2 %v4020_v39  ;;  %v66_v55 = vld [vmem:[#allocation2 + $0xf8] sm:$0xff]  ;;  %v2817_v49 = vand.u32 4294901760, %v64_v27 }
  0x57   :  { %763 = vmatpush.msra.mxu3 %v2504_v13  ;;  %411 = vmatmul.f32.vlgmr.msrb.gmra.mxu0 %v2636_v22  ;;  %v2810_v63 = vand.u32 4294901760, %v66_v55 }
  0x58   :  { %590 = vmatmul.f32.vlgmr.msrb.gmra.mxu3 %v2716_v46  ;;  %617 = vmatpush.msra.mxu0 %v2579_v35 }
  0x59   :  { %655 = vmatpush.msra.mxu1 %v2504_v13  ;;  %710 = vmatpush.msra.mxu2 %v4021_v12  ;;  %v4026_v13 = vand.u32 4294901760, %v2621_v62 }
  0x5a   :  { %765 = vmatpush.msra.mxu3 %v2517_v30  ;;  %448 = vmatmul.f32.vlgmr.msrb.gmra.mxu1 %v2636_v22 }
  0x5b   :  { %620 = vmatpush.msra.mxu0 %v2591_v45  ;;  %657 = vmatpush.msra.mxu1 %v2517_v30  ;;  %v4024_v30 = vand.u32 4294901760, %v2591_v45  ;;  %v58_v45 = vld [vmem:[#allocation2 + $0xb8] sm:$0xff] }
  0x5c   :  { %714 = vmatpush.msra.mxu2 %v4022_v32  ;;  %767 = vmatpush.msra.mxu3 %v2530_v51 }
  0x5d   :  { %623 = vmatpush.msra.mxu0 %v2608_v60  ;;  %659 = vmatpush.msra.mxu1 %v2530_v51  ;;  %v4025_v51 = vand.u32 4294901760, %v2608_v60  ;;  %v2837_v60 = vsub.f32 %v64_v27, %v2817_v49 }
  0x5e   :  { %718 = vmatpush.msra.mxu2 %v4023_v24  ;;  %769 = vmatpush.msra.mxu3 %v2545_v28 }
  0x5f   :  { %626 = vmatpush.msra.mxu0 %v2621_v62  ;;  %661 = vmatpush.msra.mxu1 %v2545_v28  ;;  %v62_v28 = vld [vmem:[#allocation2 + $0xd8] sm:$0xff]  ;;  %v56_v62 = vld [vmem:[#allocation2 + $0xa8] sm:$0xff] }
  0x60   :  { %722 = vmatpush.msra.mxu2 %v4024_v30  ;;  %771 = vmatpush.msra.mxu3 %v2552_v7  ;;  %v2824_v35 = vand.u32 4294901760, %v62_v28  ;;  %v40_v30 = vld [vmem:[#allocation2 + $0x28] sm:$0xff] }
  0x61   :  { %629 = vmatpush.msra.mxu0 %v2634_v61  ;;  %663 = vmatpush.msra.mxu1 %v2552_v7  ;;  %v60_v7 = vld [vmem:[#allocation2 + $0xc8] sm:$0xff] }
  0x62   :  { %726 = vmatpush.msra.mxu2 %v4025_v51  ;;  %773 = vmatpush.msra.mxu3 %v2565_v23  ;;  %v2848_v61 = vsub.f32 %v62_v28, %v2824_v35  ;;  %v2945_v28 = vand.u32 4294901760, %v42_v57 }
  0x63   :  { %632 = vmatpush.msra.mxu0 %v2649_v16  ;;  %665 = vmatpush.msra.mxu1 %v2565_v23  ;;  %v2827_v23 = vsub.f32 %v66_v55, %v2810_v63  ;;  %v3956_v55 = vand.u32 4294901760, %v2917_v54 }
  0x64   :  { %730 = vmatpush.msra.mxu2 %v4026_v13  ;;  %775 = vmatpush.msra.mxu3 %v2586_v31  ;;  %v3965_v3 = vand.u32 4294901760, %v2848_v61  ;;  %v2948_v13 = vsub.f32 %v46_v19, %v2923_v0 }
  0x65   :  { %635 = vmatpush.msra.mxu0 %v2673_v47  ;;  %667 = vmatpush.msra.mxu1 %v2586_v31  ;;  %v2834_v31 = vand.u32 4294901760, %v60_v7  ;;  %v3968_v16 = vand.u32 4294901760, %v2827_v23 }
  0x66   :  { %734 = vmatpush.msra.mxu2 %v561_v4  ;;  %777 = vmatpush.msra.mxu3 %v2598_v58  ;;  %v54_v4 = vld [vmem:[#allocation2 + $0x98] sm:$0xff]  ;;  %v3957_v19 = vand.u32 4294901760, %v2948_v13 }
  0x67   :  { %638 = vmatpush.msra.mxu0 %v2688_v38  ;;  %669 = vmatpush.msra.mxu1 %v2598_v58  ;;  %v2844_v58 = vand.u32 4294901760, %v58_v45  ;;  %v2859_v47 = vsub.f32 %v60_v7, %v2834_v31  ;;  %v2869_v38 = vand.u32 4294901760, %v54_v4 }
  0x68   :  { %738 = vmatpush.msra.mxu2 %v567_v29  ;;  %779 = vmatpush.msra.mxu3 %v2610_v36  ;;  %v3966_v29 = vand.u32 4294901760, %v2837_v60 }
  0x69   :  { %641 = vmatpush.msra.mxu0 %v2699_v42  ;;  %671 = vmatpush.msra.mxu1 %v2610_v36  ;;  %v2855_v36 = vand.u32 4294901760, %v56_v62  ;;  %v2873_v59 = vsub.f32 %v58_v45, %v2844_v58  ;;  %v3963_v9 = vand.u32 4294901760, %v2859_v47  ;;  %v2899_v8 = vsub.f32 %v54_v4, %v2869_v38  ;;  %v38_v45 = vld [vmem:[#allocation2 + $0x18] sm:$0xff] }
  0x6a   :  { %742 = vmatpush.msra.mxu2 %v573_v5  ;;  %781 = vmatpush.msra.mxu3 %v2623_v1  ;;  %v52_v5 = vld [vmem:[#allocation2 + $0x88] sm:$0xff] }
  0x6b   :  { %644 = vmatmul.f32.vlgmr.msra.gmra.mxu0 %v2735_v40  ;;  %673 = vmatpush.msra.mxu1 %v2623_v1  ;;  %v837_v1 = vsub.f32 %v2827_v23, %v3968_v16  ;;  %v2882_v42 = vand.u32 4294901760, %v52_v5  ;;  %v3962_v10 = vand.u32 4294901760, %v2873_v59  ;;  %v855_v34 = vsub.f32 %v2859_v47, %v3963_v9 }
  0x6c   :  { %794 = vmatpush.msrb.mxu0 %v2810_v63  ;;  %746 = vmatpush.msra.mxu2 %v579_v18  ;;  %v2886_v18 = vsub.f32 %v56_v62, %v2855_v36  ;;  %v3959_v56 = vand.u32 4294901760, %v2899_v8 }
  0x6d   :  { %783 = vmatpush.msra.mxu3 %v2646_v37  ;;  %675 = vmatpush.msra.mxu1 %v2646_v37  ;;  %v843_v37 = vsub.f32 %v2837_v60, %v3966_v29  ;;  %v838_v25 = vand.u32 4294901760, %v837_v1  ;;  %v2912_v44 = vsub.f32 %v52_v5, %v2882_v42  ;;  %v861_v53 = vsub.f32 %v2873_v59, %v3962_v10 }
  0x6e   :  { %796 = vmatpush.msrb.mxu0 %v2817_v49  ;;  %750 = vmatpush.msra.mxu2 %v585_v20  ;;  %v849_v20 = vsub.f32 %v2848_v61, %v3965_v3  ;;  %v3960_v11 = vand.u32 4294901760, %v2886_v18  ;;  %v856_v39 = vand.u32 4294901760, %v855_v34  ;;  %v873_v51 = vsub.f32 %v2899_v8, %v3959_v56 }
  0x6f   :  { %785 = vmatpush.msra.mxu3 %v2662_v6  ;;  %752 = vmatmul.f32.vlgmr.msra.gmra.mxu2 %v2716_v46  ;;  %v844_v41 = vand.u32 4294901760, %v843_v37  ;;  %v3958_v24 = vand.u32 4294901760, %v2912_v44  ;;  %v862_v27 = vand.u32 4294901760, %v861_v53  ;;  %v2957_v5 = vand.u32 4294901760, %v40_v30 }
  0x70   :  { %798 = vmatpush.msrb.mxu0 %v2824_v35  ;;  %937 = vmatpush.msrb.mxu2 %v2827_v23  ;;  %v850_v50 = vand.u32 4294901760, %v849_v20  ;;  %v867_v12 = vsub.f32 %v2886_v18, %v3960_v11  ;;  %v885_v37 = vsub.f32 %v2917_v54, %v3956_v55  ;;  %v2968_v20 = vand.u32 4294901760, %v38_v45  ;;  %v92_v55 = vld [vmem:[#allocation2 + $0x1c8] sm:$0xff]  ;;  %v90_v11 = vld [vmem:[#allocation2 + $0x1b8] sm:$0xff] }
  0x71   :  { %677 = vmatpush.msra.mxu1 %v2662_v6  ;;  %787 = vmatpush.msra.mxu3 %v2675_v21  ;;  %v2903_v6 = vand.u32 4294901760, %v48_v14  ;;  %v879_v4 = vsub.f32 %v2912_v44, %v3958_v24  ;;  %v3030_v9 = vand.u32 4294901760, %v90_v11 }
  0x72   :  { %789 = vmatmul.f32.vlgmr.msra.gmra.mxu3 %v2716_v46  ;;  %800 = vmatpush.msrb.mxu0 %v2834_v31  ;;  %v868_v62 = vand.u32 4294901760, %v867_v12  ;;  %v2986_v12 = vsub.f32 %v40_v30, %v2957_v5  ;;  %v4029_v46 = vand.u32 4294901760, %v2827_v23 }
  0x73   :  { %940 = vmatpush.msrb.mxu2 %v2837_v60  ;;  %990 = vmatpush.msrb.mxu3 %v2810_v63  ;;  %v2929_v26 = vsub.f32 %v48_v14, %v2903_v6  ;;  %v36_v14 = vld [vmem:[#allocation2 + $0x8] sm:$0xff]  ;;  %v880_v53 = vand.u32 4294901760, %v879_v4 }
  0x74   :  { %679 = vmatpush.msra.mxu1 %v2675_v21  ;;  %802 = vmatpush.msrb.mxu0 %v2844_v58  ;;  %v44_v21 = vld [vmem:[#allocation2 + $0x48] sm:$0xff] }
  0x75   :  { %683 = vmatmul.f32.vlgmr.msra.gmra.mxu1 %v2746_v52  ;;  %943 = vmatpush.msrb.mxu2 %v2848_v61  ;;  %v2935_v32 = vand.u32 4294901760, %v44_v21  ;;  %v3955_v7 = vand.u32 4294901760, %v2929_v26 }
  0x76   :  { %839 = vmatpush.msrb.mxu1 %v838_v25  ;;  %992 = vmatpush.msrb.mxu3 %v2817_v49  ;;  %v874_v25 = vand.u32 4294901760, %v873_v51  ;;  %v94_v51 = vld [vmem:[#allocation2 + $0x1d8] sm:$0xff] }
  0x77   :  { %804 = vmatpush.msrb.mxu0 %v2855_v36  ;;  %946 = vmatpush.msrb.mxu2 %v2859_v47  ;;  %v2960_v1 = vsub.f32 %v44_v21, %v2935_v32  ;;  %v891_v34 = vsub.f32 %v2929_v26, %v3955_v7  ;;  %v2979_v21 = vand.u32 4294901760, %v98_v17  ;;  %v2996_v7 = vsub.f32 %v38_v45, %v2968_v20 }
  0x78   :  { %845 = vmatpush.msrb.mxu1 %v844_v41  ;;  %994 = vmatpush.msrb.mxu3 %v2824_v35  ;;  %v2972_v41 = vsub.f32 %v42_v57, %v2945_v28  ;;  %v3967_v45 = vand.u32 4294901760, %v2986_v12  ;;  %v3013_v56 = vand.u32 4294901760, %v94_v51 }
  0x79   :  { %806 = vmatpush.msrb.mxu0 %v2869_v38  ;;  %949 = vmatpush.msrb.mxu2 %v2873_v59  ;;  %v3961_v57 = vand.u32 4294901760, %v2960_v1 }
  0x7a   :  { %851 = vmatpush.msrb.mxu1 %v850_v50  ;;  %996 = vmatpush.msrb.mxu3 %v2834_v31  ;;  %v96_v50 = vld [vmem:[#allocation2 + $0x1e8] sm:$0xff]  ;;  %v3964_v4 = vand.u32 4294901760, %v2972_v41  ;;  %v3038_v3 = vsub.f32 %v94_v51, %v3013_v56 }
  0x7b   :  { %808 = vmatpush.msrb.mxu0 %v2882_v42  ;;  %952 = vmatpush.msrb.mxu2 %v2886_v18  ;;  %v2998_v30 = vand.u32 4294901760, %v96_v50 }
  0x7c   :  { %857 = vmatpush.msrb.mxu1 %v856_v39  ;;  %998 = vmatpush.msrb.mxu3 %v2844_v58  ;;  %v2982_v39 = vand.u32 4294901760, %v36_v14 }
  0x7d   :  { %810 = vmatpush.msrb.mxu0 %v2890_v2  ;;  %955 = vmatpush.msrb.mxu2 %v2899_v8  ;;  %4028 = vst [vmem:[#allocation15_spill] sm:$0xff] %v2998_v30 }
  0x7e   :  { %863 = vmatpush.msrb.mxu1 %v862_v27  ;;  %1000 = vmatpush.msrb.mxu3 %v2855_v36  ;;  %4027 = vst [vmem:[#allocation14_spill] sm:$0xff] %v2982_v39  ;;  %v886_v27 = vand.u32 4294901760, %v885_v37  ;;  %v892_v37 = vand.u32 4294901760, %v891_v34  ;;  %v3011_v24 = vsub.f32 %v36_v14, %v2982_v39  ;;  %v3969_v14 = vand.u32 4294901760, %v2996_v7 }
  0x7f   :  { %812 = vmatpush.msrb.mxu0 %v2903_v6  ;;  %958 = vmatpush.msrb.mxu2 %v2912_v44 }
  0x80   :  { %869 = vmatpush.msrb.mxu1 %v868_v62  ;;  %1002 = vmatpush.msrb.mxu3 %v2869_v38  ;;  %v897_v62 = vsub.f32 %v2948_v13, %v3957_v19  ;;  %v903_v19 = vsub.f32 %v2960_v1, %v3961_v57  ;;  %v3025_v57 = vsub.f32 %v96_v50, %v2998_v30  ;;  %v3975_v50 = vand.u32 4294901760, %v3011_v24 }
  0x81   :  { %814 = vmatpush.msrb.mxu0 %v2923_v0  ;;  %961 = vmatpush.msrb.mxu2 %v2917_v54 }
  0x82   :  { %875 = vmatpush.msrb.mxu1 %v874_v25  ;;  %1004 = vmatpush.msrb.mxu3 %v2882_v42  ;;  %v3003_v25 = vsub.f32 %v98_v17, %v2979_v21  ;;  %v3017_v17 = vand.u32 4294901760, %v92_v55  ;;  %v898_v34 = vand.u32 4294901760, %v897_v62  ;;  %v904_v62 = vand.u32 4294901760, %v903_v19 }
  0x83   :  { %816 = vmatpush.msrb.mxu0 %v2935_v32  ;;  %964 = vmatpush.msrb.mxu2 %v2929_v26  ;;  %v927_v16 = vsub.f32 %v3011_v24, %v3975_v50 }
  0x84   :  { %881 = vmatpush.msrb.mxu1 %v880_v53  ;;  %1006 = vmatpush.msrb.mxu3 %v2890_v2  ;;  %v909_v53 = vsub.f32 %v2972_v41, %v3964_v4  ;;  %v3974_v10 = vand.u32 4294901760, %v3003_v25  ;;  %v915_v4 = vsub.f32 %v2986_v12, %v3967_v45  ;;  %v3043_v29 = vsub.f32 %v92_v55, %v3017_v17 }
  0x85   :  { %818 = vmatpush.msrb.mxu0 %v2945_v28  ;;  %967 = vmatpush.msrb.mxu2 %v2948_v13  ;;  %v921_v45 = vsub.f32 %v2996_v7, %v3969_v14 }
  0x86   :  { %887 = vmatpush.msrb.mxu1 %v886_v27  ;;  %1008 = vmatpush.msrb.mxu3 %v2903_v6  ;;  %v88_v27 = vld [vmem:[#allocation2 + $0x1a8] sm:$0xff]  ;;  %v910_v19 = vand.u32 4294901760, %v909_v53  ;;  %v1178_v55 = vsub.f32 %v3003_v25, %v3974_v10  ;;  %v916_v14 = vand.u32 4294901760, %v915_v4  ;;  %v82_v10 = vld [vmem:[#allocation2 + $0x178] sm:$0xff] }
  0x87   :  { %820 = vmatpush.msrb.mxu0 %v2957_v5  ;;  %970 = vmatpush.msrb.mxu2 %v2960_v1  ;;  %v3050_v51 = vand.u32 4294901760, %v88_v27  ;;  %v84_v53 = vld [vmem:[#allocation2 + $0x188] sm:$0xff]  ;;  %v922_v4 = vand.u32 4294901760, %v921_v45  ;;  %v928_v45 = vand.u32 4294901760, %v927_v16  ;;  %v3091_v48 = vand.u32 4294901760, %v82_v10 }
  0x88   :  { %893 = vmatpush.msrb.mxu1 %v892_v37  ;;  %1010 = vmatpush.msrb.mxu3 %v2923_v0  ;;  %v86_v37 = vld [vmem:[#allocation2 + $0x198] sm:$0xff]  ;;  %v3078_v43 = vand.u32 4294901760, %v84_v53  ;;  %v1179_v23 = vand.u32 4294901760, %v1178_v55  ;;  %v4034_v55 = vand.u32 4294901760, %v3043_v29 }
  0x89   :  { %822 = vmatpush.msrb.mxu0 %v2968_v20  ;;  %973 = vmatpush.msrb.mxu2 %v2972_v41  ;;  %v3065_v40 = vand.u32 4294901760, %v86_v37  ;;  %v3076_v52 = vsub.f32 %v88_v27, %v3050_v51 }
  0x8a   :  { %899 = vmatpush.msrb.mxu1 %v898_v34  ;;  %1012 = vmatpush.msrb.mxu3 %v2935_v32  ;;  %v3058_v34 = vsub.f32 %v90_v11, %v3030_v9  ;;  %v80_v11 = vld [vmem:[#allocation2 + $0x168] sm:$0xff] }
  0x8b   :  { %824 = vmatpush.msrb.mxu0 %v2982_v39  ;;  %976 = vmatpush.msrb.mxu2 %v2986_v12  ;;  %v3089_v22 = vsub.f32 %v86_v37, %v3065_v40  ;;  %v3102_v37 = vsub.f32 %v84_v53, %v3078_v43  ;;  %v3114_v53 = vsub.f32 %v82_v10, %v3091_v48 }
  0x8c   :  { %905 = vmatpush.msrb.mxu1 %v904_v62  ;;  %1014 = vmatpush.msrb.mxu3 %v2945_v28  ;;  %v4030_v62 = vand.u32 4294901760, %v3025_v57 }
  0x8d   :  { %1031 = vmatpush.msra.mxu0 %v4029_v46  ;;  %979 = vmatpush.msrb.mxu2 %v2996_v7  ;;  %v4031_v46 = vand.u32 4294901760, %v2837_v60  ;;  %v4033_v60 = vand.u32 4294901760, %v2848_v61  ;;  %v4035_v61 = vand.u32 4294901760, %v2859_v47  ;;  %v4037_v47 = vand.u32 4294901760, %v2873_v59 }
  0x8e   :  { %911 = vmatpush.msrb.mxu1 %v910_v19  ;;  %1016 = vmatpush.msrb.mxu3 %v2957_v5  ;;  %v1184_v50 = vsub.f32 %v3025_v57, %v4030_v62  ;;  %v4032_v62 = vand.u32 4294901760, %v3038_v3  ;;  %v3104_v19 = vand.u32 4294901760, %v80_v11  ;;  %v4039_v59 = vand.u32 4294901760, %v2886_v18 }
  0x8f   :  { %1035 = vmatpush.msra.mxu0 %v4031_v46  ;;  %982 = vmatpush.msrb.mxu2 %v3011_v24  ;;  %v78_v46 = vld [vmem:[#allocation2 + $0x158] sm:$0xff]  ;;  %v4040_v18 = vand.u32 4294901760, %v2899_v8 }
  0x90   :  { %917 = vmatpush.msrb.mxu1 %v916_v14  ;;  %1018 = vmatpush.msrb.mxu3 %v2968_v20  ;;  %v1190_v27 = vsub.f32 %v3038_v3, %v4032_v62  ;;  %v1196_v14 = vsub.f32 %v3043_v29, %v4034_v55  ;;  %v1185_v16 = vand.u32 4294901760, %v1184_v50  ;;  %v3983_v62 = vand.u32 4294901760, %v3089_v22 }
  0x91   :  { %1039 = vmatpush.msra.mxu0 %v4033_v60  ;;  %1135 = vmatpush.msra.mxu2 %v2979_v21  ;;  %v4036_v60 = vand.u32 4294901760, %v3058_v34  ;;  %v3127_v10 = vsub.f32 %v80_v11, %v3104_v19 }
  0x92   :  { %923 = vmatpush.msrb.mxu1 %v922_v4  ;;  %1020 = vmatpush.msrb.mxu3 %v2982_v39  ;;  %v76_v4 = vld [vmem:[#allocation2 + $0x148] sm:$0xff]  ;;  %v1191_v50 = vand.u32 4294901760, %v1190_v27  ;;  %v3116_v39 = vand.u32 4294901760, %v78_v46  ;;  %v1219_v27 = vand.u32 4294901760, %v3102_v37 }
  0x93   :  { %1043 = vmatpush.msra.mxu0 %v4035_v61  ;;  %1137 = vmatpush.msra.mxu2 %v2998_v30  ;;  %v1202_v55 = vsub.f32 %v3058_v34, %v4036_v60  ;;  %v1197_v61 = vand.u32 4294901760, %v1196_v14  ;;  %v74_v30 = vld [vmem:[#allocation2 + $0x138] sm:$0xff]  ;;  %v3129_v60 = vand.u32 4294901760, %v76_v4  ;;  %v1214_v14 = vsub.f32 %v3089_v22, %v3983_v62 }
  0x94   :  { %1180 = vmatpush.msra.mxu3 %v1179_v23  ;;  %929 = vmatpush.msrb.mxu1 %v928_v45  ;;  %v4038_v23 = vand.u32 4294901760, %v3076_v52  ;;  %v3140_v11 = vsub.f32 %v78_v46, %v3116_v39  ;;  %v4041_v62 = vand.u32 4294901760, %v2912_v44  ;;  %v4042_v44 = vand.u32 4294901760, %v2917_v54 }
  0x95   :  { %1047 = vmatpush.msra.mxu0 %v4037_v47  ;;  %1139 = vmatpush.msra.mxu2 %v3013_v56  ;;  %v3142_v47 = vand.u32 4294901760, %v74_v30  ;;  %v3153_v46 = vsub.f32 %v76_v4, %v3129_v60  ;;  %v1215_v8 = vand.u32 4294901760, %v1214_v14 }
  0x96   :  { %1098 = vmatpush.msra.mxu1 %v2810_v63  ;;  %1186 = vmatpush.msra.mxu3 %v1185_v16  ;;  %v1208_v45 = vsub.f32 %v3076_v52, %v4038_v23  ;;  %v1203_v63 = vand.u32 4294901760, %v1202_v55  ;;  %v1225_v16 = vand.u32 4294901760, %v3114_v53  ;;  %v72_v23 = vld [vmem:[#allocation2 + $0x128] sm:$0xff]  ;;  %v1220_v55 = vsub.f32 %v3102_v37, %v1219_v27 }
  0x97   :  { %1051 = vmatpush.msra.mxu0 %v4039_v59  ;;  %1141 = vmatpush.msra.mxu2 %v3017_v17  ;;  %v70_v59 = vld [vmem:[#allocation2 + $0x118] sm:$0xff]  ;;  %v3166_v4 = vsub.f32 %v74_v30, %v3142_v47  ;;  %v1243_v14 = vand.u32 4294901760, %v3153_v46  ;;  %v4043_v30 = vand.u32 4294901760, %v2929_v26  ;;  %v4044_v26 = vand.u32 4294901760, %v2948_v13 }
  0x98   :  { %1100 = vmatpush.msra.mxu1 %v2817_v49  ;;  %1192 = vmatpush.msra.mxu3 %v1191_v50  ;;  %v1209_v49 = vand.u32 4294901760, %v1208_v45  ;;  %v1231_v50 = vand.u32 4294901760, %v3127_v10  ;;  %v1237_v45 = vand.u32 4294901760, %v3140_v11 }
  0x99   :  { %1055 = vmatpush.msra.mxu0 %v4040_v18  ;;  %1143 = vmatpush.msra.mxu2 %v3030_v9  ;;  %v68_v18 = vld [vmem:[#allocation2 + $0x108] sm:$0xff] }
  0x9a   :  { %1102 = vmatpush.msra.mxu1 %v2824_v35  ;;  %1198 = vmatpush.msra.mxu3 %v1197_v61  ;;  %v3158_v35 = vand.u32 4294901760, %v72_v23  ;;  %v1226_v61 = vsub.f32 %v3114_v53, %v1225_v16 }
  0x9b   :  { %1059 = vmatpush.msra.mxu0 %v4041_v62  ;;  %1145 = vmatpush.msra.mxu2 %v3050_v51  ;;  %v1221_v62 = vand.u32 4294901760, %v1220_v55  ;;  %v1238_v55 = vsub.f32 %v3140_v11, %v1237_v45 }
  0x9c   :  { %1104 = vmatpush.msra.mxu1 %v2834_v31  ;;  %1204 = vmatpush.msra.mxu3 %v1203_v63  ;;  %v3171_v31 = vand.u32 4294901760, %v70_v59  ;;  %v1232_v63 = vsub.f32 %v3127_v10, %v1231_v50  ;;  %v3182_v54 = vsub.f32 %v72_v23, %v3158_v35 }
  0x9d   :  { %1063 = vmatpush.msra.mxu0 %v4042_v44  ;;  %1147 = vmatpush.msra.mxu2 %v3065_v40  ;;  %v1249_v44 = vand.u32 4294901760, %v3166_v4 }
  0x9e   :  { %1106 = vmatpush.msra.mxu1 %v2844_v58  ;;  %1210 = vmatpush.msra.mxu3 %v1209_v49  ;;  %v3184_v58 = vand.u32 4294901760, %v68_v18  ;;  %v1227_v49 = vand.u32 4294901760, %v1226_v61  ;;  %v1233_v23 = vand.u32 4294901760, %v1232_v63  ;;  %v4045_v61 = vand.u32 4294901760, %v2960_v1 }
  0x9f   :  { %1067 = vmatpush.msra.mxu0 %v4043_v30  ;;  %1149 = vmatpush.msra.mxu2 %v3078_v43  ;;  %v1255_v13 = vand.u32 4294901760, %v3182_v54  ;;  %v4046_v63 = vand.u32 4294901760, %v2972_v41 }
  0xa0   :  { %1108 = vmatpush.msra.mxu1 %v2855_v36  ;;  %1216 = vmatpush.msra.mxu3 %v1215_v8  ;;  %v3195_v36 = vsub.f32 %v70_v59, %v3171_v31  ;;  %v1244_v8 = vsub.f32 %v3153_v46, %v1243_v14  ;;  %v1239_v59 = vand.u32 4294901760, %v1238_v55 }
  0xa1   :  { %1071 = vmatpush.msra.mxu0 %v4044_v26  ;;  %1151 = vmatpush.msra.mxu2 %v3091_v48  ;;  %v1256_v30 = vsub.f32 %v3182_v54, %v1255_v13  ;;  %v4058_v26 = vld [vmem:[#allocation8_spill] sm:$0xff] }
  0xa2   :  { %1110 = vmatpush.msra.mxu1 %v2869_v38  ;;  %1222 = vmatpush.msra.mxu3 %v1221_v62  ;;  %v3206_v38 = vsub.f32 %v68_v18, %v3184_v58  ;;  %v1250_v62 = vsub.f32 %v3166_v4, %v1249_v44  ;;  %v1245_v1 = vand.u32 4294901760, %v1244_v8  ;;  %v4047_v18 = vand.u32 4294901760, %v2986_v12 }
  0xa3   :  { %1075 = vmatpush.msra.mxu0 %v4045_v61  ;;  %1153 = vmatpush.msra.mxu2 %v3104_v19  ;;  %v1257_v55 = vand.u32 4294901760, %v1256_v30 }
  0xa4   :  { %1112 = vmatpush.msra.mxu1 %v2882_v42  ;;  %1228 = vmatpush.msra.mxu3 %v1227_v49  ;;  %v1261_v42 = vand.u32 4294901760, %v3195_v36  ;;  %v1267_v41 = vand.u32 4294901760, %v3206_v38  ;;  %v4048_v49 = vand.u32 4294901760, %v2996_v7 }
  0xa5   :  { %1079 = vmatpush.msra.mxu0 %v4046_v63  ;;  %1155 = vmatpush.msra.mxu2 %v3116_v39 }
  0xa6   :  { %1114 = vmatpush.msra.mxu1 %v2890_v2  ;;  %1234 = vmatpush.msra.mxu3 %v1233_v23  ;;  %v1251_v2 = vand.u32 4294901760, %v1250_v62  ;;  %v1262_v12 = vsub.f32 %v3195_v36, %v1261_v42  ;;  %v1268_v7 = vsub.f32 %v3206_v38, %v1267_v41  ;;  %v4063_v23 = vld [vmem:[#allocation12_spill] sm:$0xff] }
  0xa7   :  { %1083 = vmatpush.msra.mxu0 %v4047_v18  ;;  %1157 = vmatpush.msra.mxu2 %v3129_v60 }
  0xa8   :  { %1116 = vmatpush.msra.mxu1 %v2903_v6  ;;  %1240 = vmatpush.msra.mxu3 %v1239_v59  ;;  %v4049_v6 = vand.u32 4294901760, %v3011_v24  ;;  %v4051_v24 = vld [vmem:[#allocation10_spill] sm:$0xff] }
  0xa9   :  { %1087 = vmatpush.msra.mxu0 %v4048_v49  ;;  %1159 = vmatpush.msra.mxu2 %v3142_v47 }
  0xaa   :  { %1118 = vmatpush.msra.mxu1 %v2923_v0  ;;  %1246 = vmatpush.msra.mxu3 %v1245_v1  ;;  %v1263_v0 = vand.u32 4294901760, %v1262_v12 }
  0xab   :  { %1091 = vmatpush.msra.mxu0 %v4049_v6  ;;  %1161 = vmatpush.msra.mxu2 %v3158_v35 }
  0xac   :  { %1120 = vmatpush.msra.mxu1 %v2935_v32  ;;  %1252 = vmatpush.msra.mxu3 %v1251_v2  ;;  %v1269_v32 = vand.u32 4294901760, %v1268_v7 }
  0xad   :  { %830 = vmatmul.f32.vlgmr.msrb.gmra.mxu0 %v2722_v33  ;;  %1163 = vmatpush.msra.mxu2 %v3171_v31  ;;  %v4050_v33 = vand.u32 4294901760, %v3003_v25 }
  0xae   :  { %1122 = vmatpush.msra.mxu1 %v2945_v28  ;;  %1278 = vmatpush.msrb.mxu0 %v3003_v25  ;;  %v4052_v28 = vand.u32 4294901760, %v3025_v57  ;;  %v4055_v25 = vand.u32 4294901760, %v3038_v3 }
  0xaf   :  { %1258 = vmatpush.msra.mxu3 %v1257_v55  ;;  %1165 = vmatpush.msra.mxu2 %v3184_v58 }
  0xb0   :  { %1124 = vmatpush.msra.mxu1 %v2957_v5  ;;  %1281 = vmatpush.msrb.mxu0 %v3025_v57  ;;  %v4053_v5 = vld [vmem:[#allocation14_spill] sm:$0xff]  ;;  %v4057_v57 = vand.u32 4294901760, %v3043_v29 }
  0xb1   :  { %1264 = vmatpush.msra.mxu3 %v1263_v0  ;;  %985 = vmatmul.f32.vlgmr.msrb.gmra.mxu2 %v2660_v15  ;;  %v4054_v15 = vld [vmem:[#allocation9_spill] sm:$0xff] }
  0xb2   :  { %1284 = vmatpush.msrb.mxu0 %v3038_v3  ;;  %1372 = vmatpush.msrb.mxu2 %v4050_v33  ;;  %v4059_v3 = vand.u32 4294901760, %v3058_v34  ;;  %v4064_v0 = vld [vmem:[#allocation13_spill] sm:$0xff] }
  0xb3   :  { %1126 = vmatpush.msra.mxu1 %v2968_v20  ;;  %1270 = vmatpush.msra.mxu3 %v1269_v32  ;;  %v4056_v20 = vld [vmem:[#allocation15_spill] sm:$0xff] }
  0xb4   :  { %1024 = vmatmul.f32.vlgmr.msrb.gmra.mxu3 %v4051_v24  ;;  %1287 = vmatpush.msrb.mxu0 %v3043_v29  ;;  %v4061_v29 = vand.u32 4294901760, %v3076_v52  ;;  %v1481_v24 = vld [vmem:[%s3935_s3 + $0x20] sm:$0xff] }
  0xb5   :  { %1376 = vmatpush.msrb.mxu2 %v4052_v28  ;;  %1439 = vmatpush.msrb.mxu3 %v2979_v21 }
  0xb6   :  { %1128 = vmatpush.msra.mxu1 %v4053_v5  ;;  %1290 = vmatpush.msrb.mxu0 %v3058_v34 }
  0xb7   :  { %931 = vmatmul.f32.vlgmr.msrb.gmra.mxu1 %v4054_v15  ;;  %1380 = vmatpush.msrb.mxu2 %v4055_v25 }
  0xb8   :  { %1331 = vmatpush.msrb.mxu1 %v2979_v21  ;;  %1441 = vmatpush.msrb.mxu3 %v4056_v20  ;;  %v4060_v21 = vld [vmem:[#allocation11_spill] sm:$0xff] }
  0xb9   :  { %1293 = vmatpush.msrb.mxu0 %v3076_v52  ;;  %1384 = vmatpush.msrb.mxu2 %v4057_v57  ;;  %v1480_v57 = vld [vmem:[%s3935_s3 + $0x18] sm:$0xff] }
  0xba   :  { %1333 = vmatpush.msrb.mxu1 %v4056_v20  ;;  %1443 = vmatpush.msrb.mxu3 %v3013_v56 }
  0xbb   :  { %1171 = vmatmul.f32.vlgmr.msra.gmra.mxu2 %v4058_v26  ;;  %1296 = vmatpush.msrb.mxu0 %v3089_v22 }
  0xbc   :  { %1335 = vmatpush.msrb.mxu1 %v3013_v56  ;;  %1388 = vmatpush.msrb.mxu2 %v4059_v3  ;;  %v4062_v56 = vand.u32 4294901760, %v3089_v22  ;;  %v1491_v22 = vld [vmem:[%s3935_s3 + $0x70] sm:$0xff] }
  0xbd   :  { %1445 = vmatpush.msrb.mxu3 %v3017_v17  ;;  %1093 = vmatmul.f32.vlgmr.msra.gmra.mxu0 %v4054_v15 }
  0xbe   :  { %1272 = vmatmul.f32.vlgmr.msra.gmra.mxu3 %v4060_v21  ;;  %1299 = vmatpush.msrb.mxu0 %v3102_v37 }
  0xbf   :  { %1337 = vmatpush.msrb.mxu1 %v3017_v17  ;;  %1392 = vmatpush.msrb.mxu2 %v4061_v29  ;;  %v1492_v17 = vld [vmem:[%s3935_s3 + $0x78] sm:$0xff]  ;;  %v3467_v29 = vand.u32 4294901760, %v1481_v24 }
  0xc0   :  { %1447 = vmatpush.msrb.mxu3 %v3030_v9  ;;  %1130 = vmatmul.f32.vlgmr.msra.gmra.mxu1 %v4054_v15  ;;  %v3300_v52 = vand.u32 4294901760, %v1492_v17 }
  0xc1   :  { %1302 = vmatpush.msrb.mxu0 %v3114_v53  ;;  %1339 = vmatpush.msrb.mxu1 %v3030_v9  ;;  %v1490_v9 = vld [vmem:[%s3935_s3 + $0x68] sm:$0xff] }
  0xc2   :  { %1396 = vmatpush.msrb.mxu2 %v4062_v56  ;;  %1449 = vmatpush.msrb.mxu3 %v3050_v51  ;;  %v3321_v34 = vsub.f32 %v1492_v17, %v3300_v52  ;;  %v3323_v37 = vand.u32 4294901760, %v1490_v9 }
  0xc3   :  { %1305 = vmatpush.msrb.mxu0 %v3127_v10  ;;  %1341 = vmatpush.msrb.mxu1 %v3050_v51  ;;  %v3310_v51 = vand.u32 4294901760, %v1491_v22  ;;  %v1487_v10 = vld [vmem:[%s3935_s3 + $0x50] sm:$0xff] }
  0xc4   :  { %1400 = vmatpush.msrb.mxu2 %v1219_v27  ;;  %1451 = vmatpush.msrb.mxu3 %v3065_v40  ;;  %v3344_v27 = vld [vmem:[%s3934_s2] sm:$0x3] }
  0xc5   :  { %1308 = vmatpush.msrb.mxu0 %v3140_v11  ;;  %1343 = vmatpush.msrb.mxu1 %v3065_v40  ;;  %v1489_v40 = vld [vmem:[%s3935_s3 + $0x60] sm:$0xff] }
  0xc6   :  { %1404 = vmatpush.msrb.mxu2 %v1225_v16  ;;  %1453 = vmatpush.msrb.mxu3 %v3078_v43  ;;  %v3336_v53 = vand.u32 4294901760, %v1489_v40  ;;  %v3353_v16 = vsub.f32 %v1490_v9, %v3323_v37 }
  0xc7   :  { %1311 = vmatpush.msrb.mxu0 %v3153_v46  ;;  %1345 = vmatpush.msrb.mxu1 %v3078_v43  ;;  %v1488_v43 = vld [vmem:[%s3935_s3 + $0x58] sm:$0xff] }
  0xc8   :  { %1408 = vmatpush.msrb.mxu2 %v1231_v50  ;;  %1455 = vmatpush.msrb.mxu3 %v3091_v48  ;;  %v3355_v11 = vand.u32 4294901760, %v1488_v43  ;;  %v1486_v50 = vld [vmem:[%s3935_s3 + $0x48] sm:$0xff]  ;;  %v1564_v61 = vand.u32 4294901760, %v3353_v16 }
  0xc9   :  { %1314 = vmatpush.msrb.mxu0 %v3166_v4  ;;  %1347 = vmatpush.msrb.mxu1 %v3091_v48  ;;  %v3334_v48 = vsub.f32 %v1491_v22, %v3310_v51  ;;  %v1485_v4 = vld [vmem:[%s3935_s3 + $0x40] sm:$0xff]  ;;  %v1479_v22 = vld [vmem:[%s3935_s3 + $0x10] sm:$0xff] }
  0xca   :  { %1412 = vmatpush.msrb.mxu2 %v1237_v45  ;;  %1457 = vmatpush.msrb.mxu3 %v3104_v19  ;;  %v3368_v45 = vsub.f32 %v1489_v40, %v3336_v53  ;;  %v3387_v59 = vsub.f32 %v1488_v43, %v3355_v11  ;;  %v1565_v30 = vsub.f32 %v3353_v16, %v1564_v61 }
  0xcb   :  { %1317 = vmatpush.msrb.mxu0 %v3182_v54  ;;  %1349 = vmatpush.msrb.mxu1 %v3104_v19  ;;  %v1552_v19 = vand.u32 4294901760, %v3321_v34  ;;  %v1558_v46 = vand.u32 4294901760, %v3334_v48  ;;  %v3392_v54 = vand.u32 4294901760, %v1485_v4 }
  0xcc   :  { %1416 = vmatpush.msrb.mxu2 %v1243_v14  ;;  %1459 = vmatpush.msrb.mxu3 %v3116_v39  ;;  %v3370_v14 = vand.u32 4294901760, %v1487_v10  ;;  %v1576_v2 = vand.u32 4294901760, %v3387_v59 }
  0xcd   :  { %1320 = vmatpush.msrb.mxu0 %v3195_v36  ;;  %1351 = vmatpush.msrb.mxu1 %v3116_v39  ;;  %v101_v39 = vperm.slane %v3344_v27, 0  ;;  %v1553_v8 = vsub.f32 %v3321_v34, %v1552_v19  ;;  %v1559_v62 = vsub.f32 %v3334_v48, %v1558_v46  ;;  %v1570_v36 = vand.u32 4294901760, %v3368_v45 }
  0xce   :  { %1420 = vmatpush.msrb.mxu2 %v1249_v44  ;;  %1461 = vmatpush.msrb.mxu3 %v3129_v60  ;;  %v149_v44 = vpop.f32.mrf.mxu0  ;;  %v3404_v63 = vsub.f32 %v1487_v10, %v3370_v14  ;;  %v1577_v28 = vsub.f32 %v3387_v59, %v1576_v2  ;;  %v3482_v10 = vand.u32 4294901760, %v1480_v57 }
  0xcf   :  { %1323 = vmatpush.msrb.mxu0 %v3206_v38  ;;  %1353 = vmatpush.msrb.mxu1 %v3129_v60  ;;  %v3378_v60 = vand.u32 4294901760, %v1486_v50  ;;  %v1554_v18 = vand.u32 4294901760, %v1553_v8  ;;  %v3426_v38 = vsub.f32 %v1485_v4, %v3392_v54  ;;  %v1560_v6 = vand.u32 4294901760, %v1559_v62  ;;  %v304_v32 = vpop.f32.mrf.mxu2  ;;  %v343_v56 = vpop.f32.mrf.mxu3  ;;  %v1478_v4 = vld [vmem:[%s3935_s3 + $0x8] sm:$0xff] }
  0xd0   :  { %1424 = vmatpush.msrb.mxu2 %v1255_v13  ;;  %1463 = vmatpush.msrb.mxu3 %v3142_v47  ;;  %v150_v13 = vadd.f32 %v149_v44, %v101_v39  ;;  %v1571_v55 = vsub.f32 %v3368_v45, %v1570_v36  ;;  %v1582_v7 = vand.u32 4294901760, %v3404_v63  ;;  %v1578_v9 = vand.u32 4294901760, %v1577_v28 }
  0xd1   :  { %1326 = vmatmul.f32.vlgmr.msrb.gmra.mxu0 %v4063_v23  ;;  %1355 = vmatpush.msrb.mxu1 %v3142_v47  ;;  %v1484_v47 = vld [vmem:[%s3935_s3 + $0x38] sm:$0xff]  ;;  %v3413_v1 = vsub.f32 %v1486_v50, %v3378_v60  ;;  %v1594_v25 = vand.u32 4294901760, %v3426_v38  ;;  %v3495_v8 = vsub.f32 %v1481_v24, %v3467_v29 }
  0xd2   :  { %1428 = vmatpush.msrb.mxu2 %v1261_v42  ;;  %1465 = vmatpush.msrb.mxu3 %v3158_v35  ;;  %v1483_v42 = vld [vmem:[%s3935_s3 + $0x30] sm:$0xff]  ;;  %v3421_v49 = vand.u32 4294901760, %v1484_v47  ;;  %v1572_v3 = vand.u32 4294901760, %v1571_v55 }
  0xd3   :  { %1357 = vmatpush.msrb.mxu1 %v3158_v35  ;;  %1510 = vmatpush.msra.mxu0 %v3300_v52  ;;  %v250_v35 = vpop.f32.mrf.mxu1  ;;  %v1588_v33 = vand.u32 4294901760, %v3413_v1  ;;  %v1595_v50 = vsub.f32 %v3426_v38, %v1594_v25 }
  0xd4   :  { %1432 = vmatpush.msrb.mxu2 %v1267_v41  ;;  %1467 = vmatpush.msrb.mxu3 %v3171_v31  ;;  %v3428_v41 = vand.u32 4294901760, %v1483_v42  ;;  %v251_v12 = vadd.f32 %v250_v35, %v150_v13  ;;  %v3450_v5 = vsub.f32 %v1484_v47, %v3421_v49  ;;  %v3497_v47 = vand.u32 4294901760, %v1479_v22 }
  0xd5   :  { %1434 = vmatmul.f32.vlgmr.msrb.gmra.mxu2 %v4060_v21  ;;  %1359 = vmatpush.msrb.mxu1 %v3171_v31  ;;  %v1482_v31 = vld [vmem:[%s3935_s3 + $0x28] sm:$0xff]  ;;  %v1589_v17 = vsub.f32 %v3413_v1, %v1588_v33 }
  0xd6   :  { %1469 = vmatpush.msrb.mxu3 %v3184_v58  ;;  %1512 = vmatpush.msra.mxu0 %v3310_v51  ;;  %v3452_v15 = vand.u32 4294901760, %v1482_v31  ;;  %v3458_v20 = vsub.f32 %v1483_v42, %v3428_v41  ;;  %v305_v26 = vadd.f32 %v304_v32, %v251_v12  ;;  %v1600_v40 = vand.u32 4294901760, %v3450_v5  ;;  %v412_v13 = vpop.f32.mrf.mxu0  ;;  %v1477_v42 = vld [vmem:[%s3935_s3] sm:$0xff] }
  0xd7   :  { %1471 = vmatmul.f32.vlgmr.msrb.gmra.mxu3 %v4060_v21  ;;  %1361 = vmatpush.msrb.mxu1 %v3184_v58  ;;  %v1566_v58 = vand.u32 4294901760, %v1565_v30  ;;  %v1583_v21 = vsub.f32 %v3404_v63, %v1582_v7  ;;  %v1590_v62 = vand.u32 4294901760, %v1589_v17  ;;  %v3510_v30 = vsub.f32 %v1480_v57, %v3482_v10 }
  0xd8   :  { %1365 = vmatmul.f32.vlgmr.msrb.gmra.mxu1 %v4064_v0  ;;  %1514 = vmatpush.msra.mxu0 %v3323_v37  ;;  %v3480_v43 = vsub.f32 %v1482_v31, %v3452_v15  ;;  %v1606_v39 = vand.u32 4294901760, %v3458_v20  ;;  %v344_v44 = vadd.f32 %v343_v56, %v305_v26  ;;  %v1601_v35 = vsub.f32 %v3450_v5, %v1600_v40 }
  0xd9   :  { %1555 = vmatpush.msra.mxu1 %v1554_v18  ;;  %1653 = vmatpush.msra.mxu2 %v3321_v34  ;;  %v1584_v23 = vand.u32 4294901760, %v1583_v21  ;;  %v3512_v31 = vand.u32 4294901760, %v1478_v4  ;;  %v1596_v12 = vand.u32 4294901760, %v1595_v50  ;;  %v1618_v0 = vand.u32 4294901760, %v3495_v8  ;;  %v490_v50 = vpop.f32.mrf.mxu2 }
  0xda   :  { %1516 = vmatpush.msra.mxu0 %v3336_v53  ;;  %1706 = vmatpush.msra.mxu3 %v3300_v52  ;;  %v1612_v18 = vand.u32 4294901760, %v3480_v43  ;;  %v413_v55 = vadd.f32 %v412_v13, %v344_v44  ;;  %v3522_v32 = vsub.f32 %v1479_v22, %v3497_v47  ;;  %v3524_v24 = vand.u32 4294901760, %v1477_v42 }
  0xdb   :  { %1561 = vmatpush.msra.mxu1 %v1560_v6  ;;  %1656 = vmatpush.msra.mxu2 %v3334_v48  ;;  %v1607_v6 = vsub.f32 %v3458_v20, %v1606_v39  ;;  %v1602_v28 = vand.u32 4294901760, %v1601_v35  ;;  %v1624_v26 = vand.u32 4294901760, %v3510_v30  ;;  %v1619_v17 = vsub.f32 %v3495_v8, %v1618_v0  ;;  %v1507_v48 = vld [vmem:[%s3935_s3 + $0xf0] sm:$0xff] }
  0xdc   :  { %1518 = vmatpush.msra.mxu0 %v3355_v11  ;;  %1708 = vmatpush.msra.mxu3 %v3310_v51  ;;  %v1613_v57 = vsub.f32 %v3480_v43, %v1612_v18  ;;  %v1630_v22 = vand.u32 4294901760, %v3522_v32 }
  0xdd   :  { %1567 = vmatpush.msra.mxu1 %v1566_v58  ;;  %1659 = vmatpush.msra.mxu2 %v3353_v16  ;;  %v449_v58 = vpop.f32.mrf.mxu1  ;;  %v1608_v21 = vand.u32 4294901760, %v1607_v6  ;;  %v1625_v44 = vsub.f32 %v3510_v30, %v1624_v26  ;;  %v3600_v16 = vand.u32 4294901760, %v1507_v48 }
  0xde   :  { %1520 = vmatpush.msra.mxu0 %v3370_v14  ;;  %1710 = vmatpush.msra.mxu3 %v3323_v37  ;;  %v450_v56 = vadd.f32 %v449_v58, %v413_v55 }
  0xdf   :  { %1573 = vmatpush.msra.mxu1 %v1572_v3  ;;  %1662 = vmatpush.msra.mxu2 %v3368_v45  ;;  %v3534_v3 = vsub.f32 %v1478_v4, %v3512_v31  ;;  %v1614_v4 = vand.u32 4294901760, %v1613_v57  ;;  %v1626_v6 = vand.u32 4294901760, %v1625_v44 }
  0xe0   :  { %1522 = vmatpush.msra.mxu0 %v3378_v60  ;;  %1712 = vmatpush.msra.mxu3 %v3336_v53  ;;  %v491_v13 = vadd.f32 %v490_v50, %v450_v56 }
  0xe1   :  { %1579 = vmatpush.msra.mxu1 %v1578_v9  ;;  %1665 = vmatpush.msra.mxu2 %v3387_v59  ;;  %v3544_v9 = vsub.f32 %v1477_v42, %v3524_v24  ;;  %v1631_v42 = vsub.f32 %v3522_v32, %v1630_v22 }
  0xe2   :  { %1524 = vmatpush.msra.mxu0 %v3392_v54  ;;  %1714 = vmatpush.msra.mxu3 %v3355_v11 }
  0xe3   :  { %1585 = vmatpush.msra.mxu1 %v1584_v23  ;;  %1668 = vmatpush.msra.mxu2 %v3404_v63  ;;  %v1636_v23 = vand.u32 4294901760, %v3534_v3  ;;  %v1642_v35 = vand.u32 4294901760, %v3544_v9  ;;  %v1632_v57 = vand.u32 4294901760, %v1631_v42 }
  0xe4   :  { %1526 = vmatpush.msra.mxu0 %v3421_v49  ;;  %1716 = vmatpush.msra.mxu3 %v3370_v14 }
  0xe5   :  { %1591 = vmatpush.msra.mxu1 %v1590_v62  ;;  %1671 = vmatpush.msra.mxu2 %v3413_v1  ;;  %v1620_v62 = vand.u32 4294901760, %v1619_v17  ;;  %v1637_v55 = vsub.f32 %v3534_v3, %v1636_v23 }
  0xe6   :  { %1528 = vmatpush.msra.mxu0 %v3428_v41  ;;  %1718 = vmatpush.msra.mxu3 %v3378_v60 }
  0xe7   :  { %1597 = vmatpush.msra.mxu1 %v1596_v12  ;;  %1674 = vmatpush.msra.mxu2 %v3426_v38  ;;  %v591_v12 = vpop.f32.mrf.mxu3  ;;  %v1638_v17 = vand.u32 4294901760, %v1637_v55  ;;  %v1504_v55 = vld [vmem:[%s3935_s3 + $0xd8] sm:$0xff] }
  0xe8   :  { %1530 = vmatpush.msra.mxu0 %v3452_v15  ;;  %1720 = vmatpush.msra.mxu3 %v3392_v54  ;;  %v645_v58 = vpop.f32.mrf.mxu0 }
  0xe9   :  { %1603 = vmatpush.msra.mxu1 %v1602_v28  ;;  %1677 = vmatpush.msra.mxu2 %v3450_v5  ;;  %v592_v28 = vadd.f32 %v591_v12, %v491_v13 }
  0xea   :  { %1532 = vmatpush.msra.mxu0 %v3467_v29  ;;  %1722 = vmatpush.msra.mxu3 %v3421_v49 }
  0xeb   :  { %1609 = vmatpush.msra.mxu1 %v1608_v21  ;;  %1680 = vmatpush.msra.mxu2 %v3458_v20  ;;  %v1643_v21 = vsub.f32 %v3544_v9, %v1642_v35  ;;  %v646_v56 = vadd.f32 %v645_v58, %v592_v28  ;;  %v3615_v28 = vand.u32 4294901760, %v1504_v55 }
  0xec   :  { %1534 = vmatpush.msra.mxu0 %v3482_v10  ;;  %1724 = vmatpush.msra.mxu3 %v3428_v41 }
  0xed   :  { %1615 = vmatpush.msra.mxu1 %v1614_v4  ;;  %1683 = vmatpush.msra.mxu2 %v3480_v43  ;;  %v1644_v44 = vand.u32 4294901760, %v1643_v21  ;;  %v3622_v21 = vsub.f32 %v1507_v48, %v3600_v16 }
  0xee   :  { %1536 = vmatpush.msra.mxu0 %v3497_v47  ;;  %1726 = vmatpush.msra.mxu3 %v3452_v15 }
  0xef   :  { %1621 = vmatpush.msra.mxu1 %v1620_v62  ;;  %1686 = vmatpush.msra.mxu2 %v3495_v8 }
  0xf0   :  { %1538 = vmatpush.msra.mxu0 %v3512_v31  ;;  %1728 = vmatpush.msra.mxu3 %v3467_v29 }
  0xf1   :  { %1627 = vmatpush.msra.mxu1 %v1626_v6  ;;  %1689 = vmatpush.msra.mxu2 %v3510_v30  ;;  %v1505_v6 = vld [vmem:[%s3935_s3 + $0xe0] sm:$0xff] }
  0xf2   :  { %1540 = vmatpush.msra.mxu0 %v3524_v24  ;;  %v684_v50 = vpop.f32.mrf.mxu1  ;;  %v753_v4 = vpop.f32.mrf.mxu2  ;;  %1730 = vmatpush.msra.mxu3 %v3482_v10  ;;  %v3613_v58 = vand.u32 4294901760, %v1505_v6 }
  0xf3   :  { %1633 = vmatpush.msra.mxu1 %v1632_v57  ;;  %v685_v13 = vadd.f32 %v684_v50, %v646_v56  ;;  %1692 = vmatpush.msra.mxu2 %v3522_v32  ;;  %v1899_v50 = vand.u32 4294901760, %v3622_v21 }
  0xf4   :  { %1747 = vmatpush.msrb.mxu0 %v1552_v19  ;;  %1732 = vmatpush.msra.mxu3 %v3497_v47  ;;  %v1508_v19 = vld [vmem:[%s3935_s3 + $0xf8] sm:$0xff] }
  0xf5   :  { %1639 = vmatpush.msra.mxu1 %v1638_v17  ;;  %v754_v62 = vadd.f32 %v753_v4, %v685_v13  ;;  %v790_v42 = vpop.f32.mrf.mxu3  ;;  %1695 = vmatpush.msra.mxu2 %v3534_v3  ;;  %v3598_v12 = vand.u32 4294901760, %v1508_v19  ;;  %v1498_v3 = vld [vmem:[%s3935_s3 + $0xa8] sm:$0xff] }
  0xf6   :  { %1751 = vmatpush.msrb.mxu0 %v1558_v46  ;;  %1734 = vmatpush.msra.mxu3 %v3512_v31  ;;  %v1506_v46 = vld [vmem:[%s3935_s3 + $0xe8] sm:$0xff] }
  0xf7   :  { %1645 = vmatpush.msra.mxu1 %v1644_v44  ;;  %v791_v34 = vadd.f32 %v790_v42, %v754_v62  ;;  %1698 = vmatpush.msra.mxu2 %v3544_v9  ;;  %v3619_v57 = vsub.f32 %v1508_v19, %v3598_v12  ;;  %v1497_v19 = vld [vmem:[%s3935_s3 + $0xa0] sm:$0xff] }
  0xf8   :  { %1755 = vmatpush.msrb.mxu0 %v1564_v61  ;;  %v3602_v61 = vand.u32 4294901760, %v1506_v46  ;;  %1736 = vmatpush.msra.mxu3 %v3524_v24 }
  0xf9   :  { %1814 = vmatpush.msrb.mxu1 %v3300_v52  ;;  %v1475_v52 = vmax.f32 %v791_v34, 0.0  ;;  %1851 = vmatpush.msrb.mxu2 %v3598_v12  ;;  %v1893_v17 = vand.u32 4294901760, %v3619_v57 }
  0xfa   :  { %1759 = vmatpush.msrb.mxu0 %v1570_v36  ;;  %v3625_v56 = vsub.f32 %v1506_v46, %v3602_v61  ;;  %v3633_v36 = vsub.f32 %v1505_v6, %v3613_v58 }
  0xfb   :  { %1816 = vmatpush.msrb.mxu1 %v3310_v51  ;;  %v3628_v45 = vand.u32 4294901760, %v1475_v52  ;;  %v3636_v51 = vsub.f32 %v1504_v55, %v3615_v28  ;;  %1853 = vmatpush.msrb.mxu2 %v3600_v16 }
  0xfc   :  { %1763 = vmatpush.msrb.mxu0 %v1576_v2  ;;  %v1905_v4 = vand.u32 4294901760, %v3625_v56  ;;  %v1911_v59 = vand.u32 4294901760, %v3633_v36  ;;  %v1900_v2 = vsub.f32 %v3622_v21, %v1899_v50 }
  0xfd   :  { %1818 = vmatpush.msrb.mxu1 %v3323_v37  ;;  %v1542_v44 = vsub.f32 %v1475_v52, %v3628_v45  ;;  %v1894_v37 = vsub.f32 %v3619_v57, %v1893_v17  ;;  %1855 = vmatpush.msrb.mxu2 %v3602_v61  ;;  %v1496_v52 = vld [vmem:[%s3935_s3 + $0x98] sm:$0xff] }
  0xfe   :  { %1767 = vmatpush.msrb.mxu0 %v1582_v7  ;;  %1647 = vmatmul.f32.vlgmr.msra.gmra.mxu1 %v3628_v45  ;;  %v1906_v63 = vsub.f32 %v3625_v56, %v1905_v4  ;;  %v1901_v62 = vand.u32 4294901760, %v1900_v2  ;;  %v1912_v1 = vsub.f32 %v3633_v36, %v1911_v59  ;;  %v3788_v2 = vand.u32 4294901760, %v1496_v52 }
  0xff   :  { %1820 = vmatpush.msrb.mxu1 %v3336_v53  ;;  %v1543_v13 = vand.u32 4294901760, %v1542_v44  ;;  %1701 = vmatmul.f32.vlgmr.msra.gmra.mxu2 %v1542_v44  ;;  %v1917_v53 = vand.u32 4294901760, %v3636_v51  ;;  %v1895_v7 = vand.u32 4294901760, %v1894_v37 }
 0x100   :  { %1771 = vmatpush.msrb.mxu0 %v1588_v33  ;;  %1857 = vmatpush.msrb.mxu2 %v3613_v58  ;;  %v1907_v33 = vand.u32 4294901760, %v1906_v63  ;;  %v1913_v38 = vand.u32 4294901760, %v1912_v1  ;;  %v1495_v63 = vld [vmem:[%s3935_s3 + $0x90] sm:$0xff] }
 0x101   :  { %1822 = vmatpush.msrb.mxu1 %v3355_v11  ;;  %v1544_v42 = vsub.f32 %v1542_v44, %v1543_v13  ;;  %1740 = vmatmul.f32.vlgmr.msra.gmra.mxu3 %v1543_v13  ;;  %v1918_v34 = vsub.f32 %v3636_v51, %v1917_v53  ;;  %v3806_v1 = vand.u32 4294901760, %v1495_v63 }
 0x102   :  { %1775 = vmatpush.msrb.mxu0 %v1594_v25  ;;  %1896 = vmatpush.msrb.mxu3 %v1895_v7 }
 0x103   :  { %1824 = vmatpush.msrb.mxu1 %v3370_v14  ;;  %v1545_v11 = vand.u32 4294901760, %v1544_v42  ;;  %1859 = vmatpush.msrb.mxu2 %v3615_v28  ;;  %v1919_v14 = vand.u32 4294901760, %v1918_v34  ;;  %v3804_v42 = vsub.f32 %v1496_v52, %v3788_v2 }
 0x104   :  { %1779 = vmatpush.msrb.mxu0 %v1600_v40  ;;  %1902 = vmatpush.msrb.mxu3 %v1901_v62 }
 0x105   :  { %1826 = vmatpush.msrb.mxu1 %v3378_v60  ;;  %1546 = vmatmul.f32.vlgmr.msra.gmra.mxu0 %v1545_v11  ;;  %v1503_v60 = vld [vmem:[%s3935_s3 + $0xd0] sm:$0xff] }
 0x106   :  { %1783 = vmatpush.msrb.mxu0 %v1606_v39  ;;  %1908 = vmatpush.msrb.mxu3 %v1907_v33  ;;  %v1494_v33 = vld [vmem:[%s3935_s3 + $0x88] sm:$0xff] }
 0x107   :  { %1828 = vmatpush.msrb.mxu1 %v3392_v54  ;;  %v3691_v54 = vand.u32 4294901760, %v1503_v60 }
 0x108   :  { %1787 = vmatpush.msrb.mxu0 %v1612_v18  ;;  %1914 = vmatpush.msrb.mxu3 %v1913_v38 }
 0x109   :  { %1830 = vmatpush.msrb.mxu1 %v3421_v49  ;;  %v1502_v49 = vld [vmem:[%s3935_s3 + $0xc8] sm:$0xff]  ;;  %1861 = vmatpush.msrb.mxu2 %v3691_v54 }
 0x10a   :  { %1791 = vmatpush.msrb.mxu0 %v1618_v0  ;;  %1920 = vmatpush.msrb.mxu3 %v1919_v14  ;;  %v3702_v5 = vand.u32 4294901760, %v1502_v49  ;;  %v1965_v14 = vand.u32 4294901760, %v3804_v42 }
 0x10b   :  { %1832 = vmatpush.msrb.mxu1 %v3428_v41  ;;  %v3700_v41 = vsub.f32 %v1503_v60, %v3691_v54  ;;  %v3819_v60 = vsub.f32 %v1495_v63, %v3806_v1 }
 0x10c   :  { %1795 = vmatpush.msrb.mxu0 %v1624_v26  ;;  %v3713_v20 = vsub.f32 %v1502_v49, %v3702_v5  ;;  %1863 = vmatpush.msrb.mxu2 %v3702_v5  ;;  %v3822_v49 = vand.u32 4294901760, %v1494_v33 }
 0x10d   :  { %1834 = vmatpush.msrb.mxu1 %v3452_v15  ;;  %v1501_v15 = vld [vmem:[%s3935_s3 + $0xc0] sm:$0xff]  ;;  %v1923_v25 = vand.u32 4294901760, %v3700_v41 }
 0x10e   :  { %1799 = vmatpush.msrb.mxu0 %v1630_v22  ;;  %v3715_v40 = vand.u32 4294901760, %v1501_v15  ;;  %v1929_v39 = vand.u32 4294901760, %v3713_v20 }
 0x10f   :  { %1836 = vmatpush.msrb.mxu1 %v3467_v29  ;;  %v1500_v29 = vld [vmem:[%s3935_s3 + $0xb8] sm:$0xff]  ;;  %v1924_v43 = vsub.f32 %v3700_v41, %v1923_v25 }
 0x110   :  { %1803 = vmatpush.msrb.mxu0 %v1636_v23  ;;  %v3729_v8 = vsub.f32 %v1501_v15, %v3715_v40  ;;  %v3731_v18 = vand.u32 4294901760, %v1500_v29  ;;  %1865 = vmatpush.msrb.mxu2 %v3715_v40  ;;  %v1930_v0 = vsub.f32 %v3713_v20, %v1929_v39  ;;  %v1493_v15 = vld [vmem:[%s3935_s3 + $0x80] sm:$0xff] }
 0x111   :  { %1838 = vmatpush.msrb.mxu1 %v3482_v10  ;;  %v1499_v10 = vld [vmem:[%s3935_s3 + $0xb0] sm:$0xff]  ;;  %v1925_v30 = vand.u32 4294901760, %v1924_v43  ;;  %v1966_v43 = vsub.f32 %v3804_v42, %v1965_v14  ;;  %s2297_s3 = smov [#allocation5]  }
 0x112   :  { %1807 = vmatpush.msrb.mxu0 %v1642_v35  ;;  %v1935_v32 = vand.u32 4294901760, %v3729_v8  ;;  %v3744_v26 = vsub.f32 %v1500_v29, %v3731_v18  ;;  %1867 = vmatpush.msrb.mxu2 %v3731_v18  ;;  %v1931_v22 = vand.u32 4294901760, %v1930_v0  ;;  %v3758_v35 = vand.u32 4294901760, %v1498_v3  ;;  %s2222_s30 = sshll.u32 %s2297_s3, 4  ;;  %s2223_s30 = int_to_ptr.vmem [resolvable:$true] %s2222_s30 }
 0x113   :  { %1840 = vmatpush.msrb.mxu1 %v3497_v47  ;;  %1809 = vmatmul.f32.vlgmr.msrb.gmra.mxu0 %v3628_v45  ;;  %v3749_v47 = vand.u32 4294901760, %v1499_v10  ;;  %v3837_v0 = vsub.f32 %v1494_v33, %v3822_v49 }
 0x114   :  { %1994 = vmatpush.msra.mxu0 %v3619_v57  ;;  %1926 = vmatpush.msrb.mxu3 %v1925_v30  ;;  %v1936_v9 = vsub.f32 %v3729_v8, %v1935_v32  ;;  %v1941_v23 = vand.u32 4294901760, %v3744_v26  ;;  %v3774_v6 = vsub.f32 %v1498_v3, %v3758_v35  ;;  %v3832_v30 = vand.u32 4294901760, %v1493_v15 }
 0x115   :  { %1842 = vmatpush.msrb.mxu1 %v3512_v31  ;;  %v3763_v31 = vsub.f32 %v1499_v10, %v3749_v47  ;;  %1869 = vmatpush.msrb.mxu2 %v3749_v47  ;;  %v1971_v10 = vand.u32 4294901760, %v3819_v60  ;;  %v1967_v3 = vand.u32 4294901760, %v1966_v43 }
 0x116   :  { %1997 = vmatpush.msra.mxu0 %v3622_v21  ;;  %1932 = vmatpush.msrb.mxu3 %v1931_v22  ;;  %v1937_v48 = vand.u32 4294901760, %v1936_v9  ;;  %v1942_v46 = vsub.f32 %v3744_v26, %v1941_v23  ;;  %v1953_v44 = vand.u32 4294901760, %v3774_v6  ;;  %v3844_v9 = vsub.f32 %v1493_v15, %v3832_v30 }
 0x117   :  { %1844 = vmatpush.msrb.mxu1 %v3524_v24  ;;  %v3776_v24 = vand.u32 4294901760, %v1497_v19  ;;  %v1947_v55 = vand.u32 4294901760, %v3763_v31  ;;  %1871 = vmatpush.msrb.mxu2 %v3758_v35  ;;  %v1972_v22 = vsub.f32 %v3819_v60, %v1971_v10 }
 0x118   :  { %1846 = vmatmul.f32.vlgmr.msrb.gmra.mxu1 %v3628_v45  ;;  %1938 = vmatpush.msrb.mxu3 %v1937_v48  ;;  %v1943_v45 = vand.u32 4294901760, %v1942_v46  ;;  %v1954_v7 = vsub.f32 %v3774_v6, %v1953_v44  ;;  %v1983_v46 = vand.u32 4294901760, %v3844_v9 }
 0x119   :  { %2047 = vmatpush.msra.mxu1 %v3598_v12  ;;  %v3786_v37 = vsub.f32 %v1497_v19, %v3776_v24  ;;  %2000 = vmatpush.msra.mxu0 %v3625_v56  ;;  %v1948_v13 = vsub.f32 %v3763_v31, %v1947_v55  ;;  %v1977_v19 = vand.u32 4294901760, %v3837_v0  ;;  %v1973_v48 = vand.u32 4294901760, %v1972_v22 }
 0x11a   :  { %1873 = vmatpush.msrb.mxu2 %v3776_v24  ;;  %1944 = vmatpush.msrb.mxu3 %v1943_v45  ;;  %v1955_v34 = vand.u32 4294901760, %v1954_v7  ;;  %v1984_v45 = vsub.f32 %v3844_v9, %v1983_v46 }
 0x11b   :  { %2049 = vmatpush.msra.mxu1 %v3600_v16  ;;  %v1959_v62 = vand.u32 4294901760, %v3786_v37  ;;  %2003 = vmatpush.msra.mxu0 %v3633_v36  ;;  %v1949_v11 = vand.u32 4294901760, %v1948_v13  ;;  %v1978_v52 = vsub.f32 %v3837_v0, %v1977_v19 }
 0x11c   :  { %1875 = vmatpush.msrb.mxu2 %v3788_v2  ;;  %v1985_v63 = vand.u32 4294901760, %v1984_v45 }
 0x11d   :  { %2051 = vmatpush.msra.mxu1 %v3602_v61  ;;  %v1960_v38 = vsub.f32 %v3786_v37, %v1959_v62  ;;  %2006 = vmatpush.msra.mxu0 %v3636_v51  ;;  %v1979_v13 = vand.u32 4294901760, %v1978_v52 }
 0x11e   :  { %1950 = vmatpush.msrb.mxu3 %v1949_v11  ;;  %1877 = vmatpush.msrb.mxu2 %v3806_v1 }
 0x11f   :  { %2053 = vmatpush.msra.mxu1 %v3613_v58  ;;  %v1961_v29 = vand.u32 4294901760, %v1960_v38  ;;  %2009 = vmatpush.msra.mxu0 %v3700_v41 }
 0x120   :  { %1956 = vmatpush.msrb.mxu3 %v1955_v34  ;;  %1879 = vmatpush.msrb.mxu2 %v3822_v49 }
 0x121   :  { %2055 = vmatpush.msra.mxu1 %v3615_v28  ;;  %2012 = vmatpush.msra.mxu0 %v3713_v20 }
 0x122   :  { %1962 = vmatpush.msrb.mxu3 %v1961_v29  ;;  %1881 = vmatpush.msrb.mxu2 %v3832_v30 }
 0x123   :  { %2057 = vmatpush.msra.mxu1 %v3691_v54  ;;  %2015 = vmatpush.msra.mxu0 %v3729_v8 }
 0x124   :  { %1968 = vmatpush.msrb.mxu3 %v1967_v3  ;;  %2088 = vmatpush.msra.mxu2 %v1893_v17 }
 0x125   :  { %2059 = vmatpush.msra.mxu1 %v3702_v5  ;;  %2018 = vmatpush.msra.mxu0 %v3744_v26 }
 0x126   :  { %1974 = vmatpush.msrb.mxu3 %v1973_v48  ;;  %2092 = vmatpush.msra.mxu2 %v1899_v50 }
 0x127   :  { %2061 = vmatpush.msra.mxu1 %v3715_v40  ;;  %2021 = vmatpush.msra.mxu0 %v3763_v31 }
 0x128   :  { %1980 = vmatpush.msrb.mxu3 %v1979_v13  ;;  %2096 = vmatpush.msra.mxu2 %v1905_v4 }
 0x129   :  { %2063 = vmatpush.msra.mxu1 %v3731_v18  ;;  %2024 = vmatpush.msra.mxu0 %v3774_v6 }
 0x12a   :  { %1986 = vmatpush.msrb.mxu3 %v1985_v63  ;;  %2100 = vmatpush.msra.mxu2 %v1911_v59 }
 0x12b   :  { %2065 = vmatpush.msra.mxu1 %v3749_v47  ;;  %2027 = vmatpush.msra.mxu0 %v3786_v37 }
 0x12c   :  { %2155 = vmatpush.msra.mxu3 %v3598_v12  ;;  %2104 = vmatpush.msra.mxu2 %v1917_v53  ;;  %v102_v12 = vperm.slane %v3344_v27, 1 }
 0x12d   :  { %2067 = vmatpush.msra.mxu1 %v3758_v35  ;;  %2030 = vmatpush.msra.mxu0 %v3804_v42 }
 0x12e   :  { %2157 = vmatpush.msra.mxu3 %v3600_v16  ;;  %2108 = vmatpush.msra.mxu2 %v1923_v25  ;;  %v831_v16 = vpop.f32.mrf.mxu0 }
 0x12f   :  { %2069 = vmatpush.msra.mxu1 %v3776_v24  ;;  %2033 = vmatpush.msra.mxu0 %v3819_v60  ;;  %v832_v27 = vadd.f32 %v831_v16, %v102_v12 }
 0x130   :  { %2159 = vmatpush.msra.mxu3 %v3602_v61  ;;  %2112 = vmatpush.msra.mxu2 %v1929_v39 }
 0x131   :  { %2071 = vmatpush.msra.mxu1 %v3788_v2  ;;  %2036 = vmatpush.msra.mxu0 %v3837_v0 }
 0x132   :  { %2161 = vmatpush.msra.mxu3 %v3613_v58  ;;  %2116 = vmatpush.msra.mxu2 %v1935_v32 }
 0x133   :  { %2073 = vmatpush.msra.mxu1 %v3806_v1  ;;  %2039 = vmatpush.msra.mxu0 %v3844_v9 }
 0x134   :  { %2163 = vmatpush.msra.mxu3 %v3615_v28  ;;  %2120 = vmatpush.msra.mxu2 %v1941_v23  ;;  %v932_v61 = vpop.f32.mrf.mxu1  ;;  %v986_v28 = vpop.f32.mrf.mxu2 }
 0x135   :  { %2075 = vmatpush.msra.mxu1 %v3822_v49  ;;  %v933_v58 = vadd.f32 %v932_v61, %v832_v27 }
 0x136   :  { %2165 = vmatpush.msra.mxu3 %v3691_v54  ;;  %2124 = vmatpush.msra.mxu2 %v1947_v55 }
 0x137   :  { %2077 = vmatpush.msra.mxu1 %v3832_v30  ;;  %v987_v57 = vadd.f32 %v986_v28, %v933_v58  ;;  %v1025_v21 = vpop.f32.mrf.mxu3 }
 0x138   :  { %2167 = vmatpush.msra.mxu3 %v3702_v5  ;;  %2128 = vmatpush.msra.mxu2 %v1953_v44 }
 0x139   :  { %v1026_v56 = vadd.f32 %v1025_v21, %v987_v57 }
 0x13a   :  { %2169 = vmatpush.msra.mxu3 %v3715_v40  ;;  %2132 = vmatpush.msra.mxu2 %v1959_v62  ;;  %v1094_v36 = vpop.f32.mrf.mxu0 }
 0x13b   :  { %v1095_v51 = vadd.f32 %v1094_v36, %v1026_v56 }
 0x13c   :  { %2171 = vmatpush.msra.mxu3 %v3731_v18  ;;  %2136 = vmatpush.msra.mxu2 %v1965_v14 }
 0x13d   :  { %v1131_v17 = vpop.f32.mrf.mxu1 }
 0x13e   :  { %2173 = vmatpush.msra.mxu3 %v3749_v47  ;;  %2140 = vmatpush.msra.mxu2 %v1971_v10  ;;  %v1132_v50 = vadd.f32 %v1131_v17, %v1095_v51  ;;  %v1172_v4 = vpop.f32.mrf.mxu2 }
 0x140   :  { %2175 = vmatpush.msra.mxu3 %v3758_v35  ;;  %2144 = vmatpush.msra.mxu2 %v1977_v19  ;;  %v1173_v59 = vadd.f32 %v1172_v4, %v1132_v50 }
 0x141   :  { %v1273_v53 = vpop.f32.mrf.mxu3 }
 0x142   :  { %2177 = vmatpush.msra.mxu3 %v3776_v24  ;;  %2148 = vmatpush.msra.mxu2 %v1983_v46  ;;  %v1274_v41 = vadd.f32 %v1273_v53, %v1173_v59 }
 0x144   :  { %2179 = vmatpush.msra.mxu3 %v3788_v2 }
 0x146   :  { %2181 = vmatpush.msra.mxu3 %v3806_v1 }
 0x148   :  { %2183 = vmatpush.msra.mxu3 %v3822_v49 }
 0x14a   :  { %2185 = vmatpush.msra.mxu3 %v3832_v30 }
 0x14e   :  { %v1327_v54 = vpop.f32.mrf.mxu0 }
 0x14f   :  { %v1328_v5 = vadd.f32 %v1327_v54, %v1274_v41 }
 0x155   :  { %v1366_v25 = vpop.f32.mrf.mxu1 }
 0x156   :  { %v1367_v20 = vadd.f32 %v1366_v25, %v1328_v5 }
 0x158   :  { %v1435_v40 = vpop.f32.mrf.mxu2 }
 0x159   :  { %v1436_v39 = vadd.f32 %v1435_v40, %v1367_v20 }
 0x15a   :  { %v1472_v8 = vpop.f32.mrf.mxu3 }
 0x15b   :  { %v1473_v18 = vadd.f32 %v1472_v8, %v1436_v39 }
 0x15d   :  { %v1476_v32 = vmax.f32 %v1473_v18, 0.0 }
 0x15f   :  { %v1882_v26 = vand.u32 4294901760, %v1476_v32 }
 0x161   :  { %v1883_v47 = vsub.f32 %v1476_v32, %v1882_v26  ;;  %1988 = vmatmul.f32.vlgmr.msrb.gmra.mxu3 %v1882_v26 }
 0x163   :  { %v1884_v23 = vand.u32 4294901760, %v1883_v47  ;;  %2042 = vmatmul.f32.vlgmr.msra.gmra.mxu0 %v1883_v47 }
 0x165   :  { %v1885_v35 = vsub.f32 %v1883_v47, %v1884_v23  ;;  %2081 = vmatmul.f32.vlgmr.msra.gmra.mxu1 %v1884_v23 }
 0x167   :  { %v1886_v31 = vand.u32 4294901760, %v1885_v35 }
 0x169   :  { %1887 = vmatmul.f32.vlgmr.msrb.gmra.mxu2 %v1886_v31  ;;  %2187 = vmatmul.f32.vlgmr.msra.gmra.mxu3 %v1882_v26 }
 0x171   :  { %2150 = vmatmul.f32.vlgmr.msra.gmra.mxu2 %v1882_v26 }
 0x17b   :  { %v1648_v24 = vpop.f32.mrf.mxu1 }
 0x182   :  { %v1547_v6 = vpop.f32.mrf.mxu0  ;;  %v1702_v44 = vpop.f32.mrf.mxu2 }
 0x183   :  { %v1649_v55 = vadd.f32 %v1648_v24, %v1547_v6 }
 0x184   :  { %v1741_v2 = vpop.f32.mrf.mxu3 }
 0x185   :  { %v1703_v37 = vadd.f32 %v1702_v44, %v1649_v55 }
 0x187   :  { %v1742_v62 = vadd.f32 %v1741_v2, %v1703_v37 }
 0x190   :  { %v1810_v7 = vpop.f32.mrf.mxu0 }
 0x191   :  { %v1811_v42 = vadd.f32 %v1810_v7, %v1742_v62 }
 0x195   :  { %v1847_v1 = vpop.f32.mrf.mxu1 }
 0x196   :  { %v1848_v11 = vadd.f32 %v1847_v1, %v1811_v42 }
 0x1e0   :  { %v2043_v60 = vpop.f32.mrf.mxu0 }
 0x1e2   :  { %v2082_v15 = vpop.f32.mrf.mxu1 }
 0x1e4   :  { %v1989_v33 = vpop.f32.mrf.mxu3 }
 0x1ec   :  { %v1888_v34 = vpop.f32.mrf.mxu2  ;;  %v2188_v30 = vpop.f32.mrf.mxu3 }
 0x1ed   :  { %v1889_v38 = vadd.f32 %v1888_v34, %v1848_v11 }
 0x1ef   :  { %v1990_v14 = vadd.f32 %v1989_v33, %v1889_v38 }
 0x1f1   :  { %v2044_v49 = vadd.f32 %v2043_v60, %v1990_v14 }
 0x1f3   :  { %v2083_v29 = vadd.f32 %v2082_v15, %v2044_v49 }
 0x1f4   :  { %v2151_v43 = vpop.f32.mrf.mxu2 }
 0x1f5   :  { %v2152_v10 = vadd.f32 %v2151_v43, %v2083_v29 }
 0x1f7   :  { %v2189_v0 = vadd.f32 %v2188_v30, %v2152_v10 }
 0x1f9   :  { %v2192_v3 = vsel %vm2191_vm0, %v2189_v0, -inf }
 0x1fa   :  { %2193 = vmax.xlane.f32.xlu0 %v2192_v3 }
 0x26d   :  { %v2194_v22 = vpop.xlane.xlu0 %2193 }
 0x26e   :  { %v2195_v9 = vsub.f32 %v2189_v0, %v2194_v22 }
 0x270   :  { %v2196_v19 = vmul.f32 1.442695, %v2195_v9 }
 0x272   :  { %2238 = vpow2.f32 %v2196_v19 }
 0x278   :  { %v2239_v48 = vpop.eup %2238 }
 0x279   :  { %v2198_v46 = vsel %vm2191_vm0, %v2239_v48, 0.0 }
 0x27a   :  { %2199 = vadd.xlane.f32.xlu0 %v2198_v46 }
 0x2ed   :  { %v2200_v52 = vpop.xlane.xlu0 %2199 }
 0x2ee   :  { %2240 = vrcp.f32 %v2200_v52  ;;  %v2212_v12 = vand.u32 2147483648, %v2200_v52  ;;  %v2210_v27 = vand.u32 2147483647, %v2200_v52  ;;  %vm2206_vm2 = vweird.f32 %v2200_v52 }
 0x2f0   :  { %v2213_v58 = vor.u32 1.1754944e-38, %v2212_v12  ;;  %vm2211_vm4 = vcmp.eq.f32.partialorder %v2210_v27, 8.507059e+37 }
 0x2f4   :  { %v2241_v45 = vpop.eup %2240 }
 0x2f5   :  { %v2202_v13 = vmul.f32 %v2241_v45, %v2200_v52  ;;  %vm2207_vm1 = vweird.f32 %v2241_v45 }
 0x2f6   :  { %vm2208_vm3 = vmor %vm2206_vm2, %vm2207_vm1 }
 0x2f7   :  { %v2203_v63 = vsub.f32 1.0, %v2202_v13 }
 0x2f9   :  { %v2204_v16 = vmul.f32 %v2241_v45, %v2203_v63 }
 0x2fb   :  { %v2205_v61 = vadd.f32 %v2241_v45, %v2204_v16 }
 0x2fd   :  { %v2209_v28 = vsel %vm2208_vm3, %v2241_v45, %v2205_v61 }
 0x2fe   :  { %v2214_v57 = vsel %vm2211_vm4, %v2213_v58, %v2209_v28 }
 0x2ff   :  { %v2215_v21 = vmul.f32 %v2239_v48, %v2214_v57 }
 0x301   :  { %2216 = vst.msk [vmem:[#allocation5] sm:$0x3] %vm2191_vm0, %v2215_v21 }
 0x302   :  { %2227 = dma.vmem_to_hbm [thread:$0]  %s2223_s30, 32, %s2225_s7, [#allocation4]  }
 0x303   :  { %2292 = dma.done.wait [#allocation4], 32  }
 0x304   :  { %2293 = vsyncadd [#allocation4], 4294967264 }
 0x305   :  { %2232 = vsyncpa [#allocation3], 1 }
 0x306   :  { %2233 = vsyncpa [#allocation4], 1 }

</bundles_post_ra>
